<compile_context>
chip_gen: v7x
topology: tpu7x:2x2x1
jax: 0.10.0
libtpu: 0.0.40
codegen_flags: <defaults>
</compile_context>

<pallas_src>
import math
import functools

import jax
import jax.numpy as jnp
from jax.experimental import pallas as pl
from jax.experimental.pallas import tpu as pltpu


def wavenet_kernel(x_ref, pos_ref,
                   w_init_ref, b_init_ref,
                   wd_ref, bd_ref,
                   wrs_ref, brs_ref,
                   wf1_ref, bf1_ref, wf2_ref, bf2_ref,
                   out_ref, *,
                   num_res_layers, dilation_cycle, res_channels, skip_channels):
    f32, bf16 = jnp.float32, jnp.bfloat16
    BT, L, Cin = x_ref.shape
    M = BT * L
    R, S = res_channels, skip_channels
    c_res = math.sqrt(0.5)

    # (BT, L, Cin) -> (BT*L, Cin): all positions of all folded sequences on sublanes.
    x = x_ref[...].reshape(M, Cin).astype(bf16)

    # init_conv: 1x1 conv + ReLU (k=1 conv == matmul over channels).
    h = jnp.maximum(
        jnp.dot(x, w_init_ref[...], preferred_element_type=f32) + b_init_ref[...],
        0.0)

    pos = pos_ref[...]            # (M, 1) int32: position of each row inside its sequence
    masks = {}                    # one (mask_m, mask_p) pair per distinct dilation

    skip_acc = jnp.zeros((M, S), f32)
    for n in range(num_res_layers):          # unrolled: static dilations / tap weights
        d = 2 ** (n % dilation_cycle)
        h16 = h.astype(bf16)
        bd_n = bd_ref[n]                     # (1, 2R)
        if d < L:
            if d not in masks:
                # zero padding at sequence boundaries == masking the rolled taps
                masks[d] = (pos >= d, pos < (L - d))
            mask_m, mask_p = masks[d]
            # h_m[l] = h[l-d], h_p[l] = h[l+d] via XLU sublane rolls + masks
            h_m = jnp.where(mask_m, pltpu.roll(h, d, 0), 0.0).astype(bf16)
            h_p = jnp.where(mask_p, pltpu.roll(h, M - d, 0), 0.0).astype(bf16)
            # fused dilated k=3 conv: one (R -> 2R) matmul per tap (tanh||sigmoid halves)
            hc = (jnp.dot(h_m, wd_ref[n, 0], preferred_element_type=f32)
                  + jnp.dot(h16, wd_ref[n, 1], preferred_element_type=f32)
                  + jnp.dot(h_p, wd_ref[n, 2], preferred_element_type=f32)
                  + bd_n)
        else:
            # dilation >= sequence length: both shifted taps read only padding zeros
            hc = jnp.dot(h16, wd_ref[n, 1], preferred_element_type=f32) + bd_n

        gate = jnp.tanh(hc[:, :R]) * jax.nn.sigmoid(hc[:, R:])

        # fused residual+skip 1x1 convs; sqrt(0.5)/sqrt(1/N) pre-folded into weights
        rs = jnp.dot(gate.astype(bf16), wrs_ref[n],
                     preferred_element_type=f32) + brs_ref[n]
        h = h * c_res + rs[:, :R]
        skip_acc = skip_acc + rs[:, R:]

    # final_conv: 1x1 conv -> ReLU -> 1x1 conv (output channels padded lane-dense)
    f1 = jnp.maximum(
        jnp.dot(skip_acc.astype(bf16), wf1_ref[...], preferred_element_type=f32)
        + bf1_ref[...], 0.0)
    out = jnp.dot(f1.astype(bf16), wf2_ref[...], preferred_element_type=f32) + bf2_ref[...]
    out_ref[...] = out.reshape(BT, L, out_ref.shape[-1]).astype(out_ref.dtype)


def wavenet_forward(x, kernel_params, *, num_res_layers, dilation_cycle,
                    res_channels, skip_channels, out_channels, batch_tile=None):
    B, L, Cin = x.shape
    if batch_tile is None:
        batch_tile = B
    assert B % batch_tile == 0, (B, batch_tile)
    M = batch_tile * L
    cout_pad = kernel_params['wf2'].shape[-1]

    # Position-within-sequence for every row of the folded (batch_tile*L, C) slab.
    pos = jnp.tile(jnp.arange(L, dtype=jnp.int32), batch_tile)[:, None]      # (M, 1)

    weight_args = (
        kernel_params['w_init'], kernel_params['b_init'],
        kernel_params['wd'], kernel_params['bd'],
        kernel_params['wrs'], kernel_params['brs'],
        kernel_params['wf1'], kernel_params['bf1'],
        kernel_params['wf2'], kernel_params['bf2'],
    )

    def full_spec(a):
        nd = a.ndim
        return pl.BlockSpec(a.shape, lambda g, nd=nd: (0,) * nd)

    in_specs = ([pl.BlockSpec((batch_tile, L, Cin), lambda g: (g, 0, 0)),
                 full_spec(pos)]
                + [full_spec(a) for a in weight_args])
    out_spec = pl.BlockSpec((batch_tile, L, cout_pad), lambda g: (g, 0, 0))

    # Explicit VMEM budget: resident blocks (double-buffered by default) + headroom.
    resident = sum(int(a.size) * a.dtype.itemsize for a in weight_args)
    resident += int(pos.size) * pos.dtype.itemsize
    resident += M * Cin * x.dtype.itemsize + M * cout_pad * 4
    vmem_limit = int(min(max(2 * resident + (4 << 20), 8 << 20), 100 << 20))

    kernel = functools.partial(
        wavenet_kernel,
        num_res_layers=num_res_layers, dilation_cycle=dilation_cycle,
        res_channels=res_channels, skip_channels=skip_channels)

    out_padded = pl.pallas_call(
        kernel,
        out_shape=jax.ShapeDtypeStruct((B, L, cout_pad), jnp.float32),
        grid=(B // batch_tile,),
        in_specs=in_specs,
        out_specs=out_spec,
        compiler_params=pltpu.CompilerParams(
            dimension_semantics=("parallel",),
            vmem_limit_bytes=vmem_limit),
    )(x, pos, *weight_args)
    return out_padded[:, :, :out_channels]


def init_params(key, in_channels, res_channels, skip_channels, out_channels,
                num_res_layers, dilation_cycle):
    """Deterministic synthetic weights in PyTorch layout, plus packed kernel layout."""
    ks = iter(jax.random.split(key, 16))

    def nrm(k, shape, fan_in):
        return jax.random.normal(k, shape, jnp.float32) * math.sqrt(2.0 / fan_in)

    R, S, N = res_channels, skip_channels, num_res_layers
    # PyTorch Conv1d weight layout: (out_channels, in_channels, kernel)
    W_init = nrm(next(ks), (R, in_channels, 1), in_channels)
    b_init = jax.random.normal(next(ks), (R,), jnp.float32) * 0.1
    Wd = nrm(next(ks), (N, 2 * R, R, 3), 3 * R)
    bd = jax.random.normal(next(ks), (N, 2 * R), jnp.float32) * 0.1
    Wr = nrm(next(ks), (N, R, R, 1), R)
    br = jax.random.normal(next(ks), (N, R), jnp.float32) * 0.1
    Ws = nrm(next(ks), (N, S, R, 1), R)
    bs = jax.random.normal(next(ks), (N, S), jnp.float32) * 0.1
    Wf1 = nrm(next(ks), (S, S, 1), S)
    bf1 = jax.random.normal(next(ks), (S,), jnp.float32) * 0.1
    Wf2 = nrm(next(ks), (out_channels, S, 1), S)
    bf2 = jax.random.normal(next(ks), (out_channels,), jnp.float32) * 0.1

    torch_params = dict(W_init=W_init, b_init=b_init, Wd=Wd, bd=bd, Wr=Wr, br=br,
                        Ws=Ws, bs=bs, Wf1=Wf1, bf1=bf1, Wf2=Wf2, bf2=bf2)

    bf16 = jnp.bfloat16
    c_res = math.sqrt(0.5)                 # folded into residual weights/bias
    c_skip = math.sqrt(1.0 / N)            # folded into skip weights/bias
    cout_pad = ((out_channels + 127) // 128) * 128   # lane-dense output width

    # dilated conv, tanh||sigmoid halves fused: (N, tap, in=R, out=2R)
    wd = jnp.transpose(Wd, (0, 3, 2, 1)).astype(bf16)
    # residual (pre-scaled) || skip (pre-scaled) fused: (N, in=R, out=R+S)
    wr_k = jnp.swapaxes(Wr[..., 0], 1, 2) * c_res
    ws_k = jnp.swapaxes(Ws[..., 0], 1, 2) * c_skip
    wrs = jnp.concatenate([wr_k, ws_k], axis=-1).astype(bf16)
    brs = jnp.concatenate([br * c_res, bs * c_skip], axis=-1)[:, None, :]
    # final 1x1 conv zero-padded to a lane-dense output width
    wf2 = jnp.zeros((S, cout_pad), jnp.float32).at[:, :out_channels].set(Wf2[:, :, 0].T)
    bf2p = jnp.zeros((cout_pad,), jnp.float32).at[:out_channels].set(bf2)

    kernel_params = dict(
        w_init=W_init[:, :, 0].T.astype(bf16),     # (Cin, R)      bf16
        b_init=b_init[None, :],                    # (1, R)        f32
        wd=wd,                                     # (N, 3, R, 2R) bf16
        bd=bd[:, None, :],                         # (N, 1, 2R)    f32
        wrs=wrs,                                   # (N, R, R+S)   bf16
        brs=brs,                                   # (N, 1, R+S)   f32
        wf1=Wf1[:, :, 0].T.astype(bf16),           # (S, S)        bf16
        bf1=bf1[None, :],                          # (1, S)        f32
        wf2=wf2.astype(bf16),                      # (S, cout_pad) bf16
        bf2=bf2p[None, :],                         # (1, cout_pad) f32
    )
    return torch_params, kernel_params


def reference_forward(x, tp, num_res_layers, dilation_cycle,
                      matmul_dtype=jnp.float32):
    """Pure-JAX replica of the PyTorch forward (NCL convs), for validation.

    matmul_dtype=bfloat16 reproduces the kernel's MXU operand precision
    (f32 accumulation) for a tight structural comparison.
    """
    def conv1d(h, w, b, dilation=1, padding=0):
        y = jax.lax.conv_general_dilated(
            h.astype(matmul_dtype), w.astype(matmul_dtype),
            window_strides=(1,), padding=[(padding, padding)],
            rhs_dilation=(dilation,), dimension_numbers=('NCH', 'OIH', 'NCH'),
            preferred_element_type=jnp.float32)
        return y + b[None, :, None]

    R = tp['Wr'].shape[1]
    h = jnp.swapaxes(x, -1, -2)                            # (B, Cin, L)
    h = jax.nn.relu(conv1d(h, tp['W_init'], tp['b_init']))
    skip = 0.0
    for n in range(num_res_layers):
        d = 2 ** (n % dilation_cycle)
        hc = conv1d(h, tp['Wd'][n], tp['bd'][n], dilation=d, padding=d)
        gate = jnp.tanh(hc[:, :R]) * jax.nn.sigmoid(hc[:, R:])
        res = conv1d(gate, tp['Wr'][n], tp['br'][n])
        sk = conv1d(gate, tp['Ws'][n], tp['bs'][n])
        h = (h + res) * math.sqrt(0.5)
        skip = skip + sk
    skip = skip * math.sqrt(1.0 / num_res_layers)
    y = jax.nn.relu(conv1d(skip, tp['Wf1'], tp['bf1']))
    y = conv1d(y, tp['Wf2'], tp['bf2'])
    return jnp.swapaxes(y, -1, -2)                         # (B, L, Cout)


if __name__ == "__main__":
    B, L = 2, 16
    in_channels, res_channels, skip_channels, out_channels = 4, 8, 8, 2
    num_res_layers, dilation_cycle = 4, 2

    key = jax.random.PRNGKey(0)
    kx, kp = jax.random.split(key)
    x = jax.random.normal(kx, (B, L, in_channels), jnp.float32)

    torch_params, kernel_params = init_params(
        kp, in_channels, res_channels, skip_channels, out_channels,
        num_res_layers, dilation_cycle)

    out = wavenet_forward(
        x, kernel_params,
        num_res_layers=num_res_layers, dilation_cycle=dilation_cycle,
        res_channels=res_channels, skip_channels=skip_channels,
        out_channels=out_channels, batch_tile=2)
    out = jax.block_until_ready(out)
    assert out.shape == (B, L, out_channels), out.shape

    # Structural check: a reference run with the kernel's precision choice
    # (bf16 MXU operands, f32 accumulation) must match closely.
    ref_bf16 = reference_forward(x, torch_params, num_res_layers, dilation_cycle,
                                 matmul_dtype=jnp.bfloat16)
    err_struct = float(jnp.max(jnp.abs(out - ref_bf16)))
    assert err_struct < 3e-2, err_struct

    # Precision check: deviation from the pure-f32 PyTorch-equivalent forward is
    # bounded and attributable to the intentional bf16-operand MXU path.
    ref_f32 = reference_forward(x, torch_params, num_res_layers, dilation_cycle)
    err_f32 = float(jnp.max(jnp.abs(out - ref_f32)))
    assert err_f32 < 1e-1, err_f32

    print("KERNEL_OK")
</pallas_src>

<mosaic_0001>
module attributes {stable_mosaic.version = 11 : i64} {
  func.func @wavenet_kernel(%arg0: i32, %arg1: memref<2x16x4xf32, #tpu.memory_space<vmem>>, %arg2: memref<32x1xi32, #tpu.memory_space<vmem>>, %arg3: memref<4x8xbf16, #tpu.memory_space<vmem>>, %arg4: memref<1x8xf32, #tpu.memory_space<vmem>>, %arg5: memref<4x3x8x16xbf16, #tpu.memory_space<vmem>>, %arg6: memref<4x1x16xf32, #tpu.memory_space<vmem>>, %arg7: memref<4x8x16xbf16, #tpu.memory_space<vmem>>, %arg8: memref<4x1x16xf32, #tpu.memory_space<vmem>>, %arg9: memref<8x8xbf16, #tpu.memory_space<vmem>>, %arg10: memref<1x8xf32, #tpu.memory_space<vmem>>, %arg11: memref<8x128xbf16, #tpu.memory_space<vmem>>, %arg12: memref<1x128xf32, #tpu.memory_space<vmem>>, %arg13: memref<2x16x128xf32, #tpu.memory_space<vmem>>) attributes {dimension_semantics = [#tpu.dimension_semantics<parallel>], iteration_bounds = array<i64: 1>, scalar_prefetch = 0 : i64, scratch_operands = 0 : i64, tpu.core_type = #tpu.core_type<tc>, window_params = [{transform_indices = @transform_0, window_bounds = array<i64: 2, 16, 4>}, {pipeline_mode = #tpu.pipeline_mode<synchronous>, transform_indices = @transform_1, window_bounds = array<i64: 32, 1>}, {pipeline_mode = #tpu.pipeline_mode<synchronous>, transform_indices = @transform_2, window_bounds = array<i64: 4, 8>}, {pipeline_mode = #tpu.pipeline_mode<synchronous>, transform_indices = @transform_3, window_bounds = array<i64: 1, 8>}, {pipeline_mode = #tpu.pipeline_mode<synchronous>, transform_indices = @transform_4, window_bounds = array<i64: 4, 3, 8, 16>}, {pipeline_mode = #tpu.pipeline_mode<synchronous>, transform_indices = @transform_5, window_bounds = array<i64: 4, 1, 16>}, {pipeline_mode = #tpu.pipeline_mode<synchronous>, transform_indices = @transform_6, window_bounds = array<i64: 4, 8, 16>}, {pipeline_mode = #tpu.pipeline_mode<synchronous>, transform_indices = @transform_7, window_bounds = array<i64: 4, 1, 16>}, {pipeline_mode = #tpu.pipeline_mode<synchronous>, transform_indices = @transform_8, window_bounds = array<i64: 8, 8>}, {pipeline_mode = #tpu.pipeline_mode<synchronous>, transform_indices = @transform_9, window_bounds = array<i64: 1, 8>}, {pipeline_mode = #tpu.pipeline_mode<synchronous>, transform_indices = @transform_10, window_bounds = array<i64: 8, 128>}, {pipeline_mode = #tpu.pipeline_mode<synchronous>, transform_indices = @transform_11, window_bounds = array<i64: 1, 128>}, {transform_indices = @transform_12, window_bounds = array<i64: 2, 16, 128>}]} {
    %c0 = arith.constant 0 : index
    %c0_0 = arith.constant 0 : index
    %c0_1 = arith.constant 0 : index
    %0 = vector.load %arg1[%c0, %c0_0, %c0_1] : memref<2x16x4xf32, #tpu.memory_space<vmem>>, vector<2x16x4xf32>
    %1 = vector.shape_cast %0 : vector<2x16x4xf32> to vector<32x4xf32>
    %2 = arith.truncf %1 : vector<32x4xf32> to vector<32x4xbf16>
    %c0_2 = arith.constant 0 : index
    %c0_3 = arith.constant 0 : index
    %3 = vector.load %arg3[%c0_2, %c0_3] : memref<4x8xbf16, #tpu.memory_space<vmem>>, vector<4x8xbf16>
    %cst = arith.constant dense<0.000000e+00> : vector<32x8xf32>
    %4 = tpu.matmul %2, %3, %cst {dimension_numbers = #tpu.dot_dimension_numbers<[1], [0], [0], [1], [0, 0, 1, 1], [], []>} : vector<32x4xbf16>, vector<4x8xbf16>, vector<32x8xf32> -> vector<32x8xf32>
    %c0_4 = arith.constant 0 : index
    %c0_5 = arith.constant 0 : index
    %5 = vector.load %arg4[%c0_4, %c0_5] : memref<1x8xf32, #tpu.memory_space<vmem>>, vector<1x8xf32>
    %6 = vector.broadcast %5 : vector<1x8xf32> to vector<32x8xf32>
    %7 = arith.addf %4, %6 : vector<32x8xf32>
    %cst_6 = arith.constant 0.000000e+00 : f32
    %8 = vector.broadcast %cst_6 : f32 to vector<32x8xf32>
    %9 = arith.maximumf %7, %8 : vector<32x8xf32>
    %c0_7 = arith.constant 0 : index
    %c0_8 = arith.constant 0 : index
    %10 = vector.load %arg2[%c0_7, %c0_8] : memref<32x1xi32, #tpu.memory_space<vmem>>, vector<32x1xi32>
    %cst_9 = arith.constant 0.000000e+00 : f32
    %11 = vector.broadcast %cst_9 : f32 to vector<32x8xf32>
    %12 = arith.truncf %9 : vector<32x8xf32> to vector<32x8xbf16>
    %c0_10 = arith.constant 0 : index
    %c0_11 = arith.constant 0 : index
    %c0_12 = arith.constant 0 : index
    %13 = vector.load %arg6[%c0_10, %c0_11, %c0_12] : memref<4x1x16xf32, #tpu.memory_space<vmem>>, vector<1x1x16xf32>
    %14 = vector.shape_cast %13 : vector<1x1x16xf32> to vector<1x16xf32>
    %c1_i32 = arith.constant 1 : i32
    %15 = vector.broadcast %c1_i32 : i32 to vector<32x1xi32>
    %16 = arith.cmpi sge, %10, %15 : vector<32x1xi32>
    %c15_i32 = arith.constant 15 : i32
    %17 = vector.broadcast %c15_i32 : i32 to vector<32x1xi32>
    %18 = arith.cmpi slt, %10, %17 : vector<32x1xi32>
    %c1_i32_13 = arith.constant 1 : i32
    %19 = tpu.dynamic_rotate %9 by %c1_i32_13 dim 0 : vector<32x8xf32>, i32 -> vector<32x8xf32>
    %cst_14 = arith.constant 0.000000e+00 : f32
    %20 = vector.shape_cast %16 : vector<32x1xi1> to vector<32x1xi1>
    %21 = vector.broadcast %20 : vector<32x1xi1> to vector<32x8xi1>
    %22 = vector.broadcast %cst_14 : f32 to vector<32x8xf32>
    %23 = arith.select %21, %19, %22 : vector<32x8xi1>, vector<32x8xf32>
    %24 = arith.truncf %23 : vector<32x8xf32> to vector<32x8xbf16>
    %c31_i32 = arith.constant 31 : i32
    %25 = tpu.dynamic_rotate %9 by %c31_i32 dim 0 : vector<32x8xf32>, i32 -> vector<32x8xf32>
    %cst_15 = arith.constant 0.000000e+00 : f32
    %26 = vector.shape_cast %18 : vector<32x1xi1> to vector<32x1xi1>
    %27 = vector.broadcast %26 : vector<32x1xi1> to vector<32x8xi1>
    %28 = vector.broadcast %cst_15 : f32 to vector<32x8xf32>
    %29 = arith.select %27, %25, %28 : vector<32x8xi1>, vector<32x8xf32>
    %30 = arith.truncf %29 : vector<32x8xf32> to vector<32x8xbf16>
    %c0_16 = arith.constant 0 : index
    %c0_17 = arith.constant 0 : index
    %c0_18 = arith.constant 0 : index
    %c0_19 = arith.constant 0 : index
    %31 = vector.load %arg5[%c0_16, %c0_17, %c0_18, %c0_19] : memref<4x3x8x16xbf16, #tpu.memory_space<vmem>>, vector<1x1x8x16xbf16>
    %32 = vector.shape_cast %31 : vector<1x1x8x16xbf16> to vector<8x16xbf16>
    %cst_20 = arith.constant dense<0.000000e+00> : vector<32x16xf32>
    %33 = tpu.matmul %24, %32, %cst_20 {dimension_numbers = #tpu.dot_dimension_numbers<[1], [0], [0], [1], [0, 0, 1, 1], [], []>} : vector<32x8xbf16>, vector<8x16xbf16>, vector<32x16xf32> -> vector<32x16xf32>
    %c0_21 = arith.constant 0 : index
    %c1 = arith.constant 1 : index
    %c0_22 = arith.constant 0 : index
    %c0_23 = arith.constant 0 : index
    %34 = vector.load %arg5[%c0_21, %c1, %c0_22, %c0_23] : memref<4x3x8x16xbf16, #tpu.memory_space<vmem>>, vector<1x1x8x16xbf16>
    %35 = vector.shape_cast %34 : vector<1x1x8x16xbf16> to vector<8x16xbf16>
    %cst_24 = arith.constant dense<0.000000e+00> : vector<32x16xf32>
    %36 = tpu.matmul %12, %35, %cst_24 {dimension_numbers = #tpu.dot_dimension_numbers<[1], [0], [0], [1], [0, 0, 1, 1], [], []>} : vector<32x8xbf16>, vector<8x16xbf16>, vector<32x16xf32> -> vector<32x16xf32>
    %37 = arith.addf %33, %36 : vector<32x16xf32>
    %c0_25 = arith.constant 0 : index
    %c2 = arith.constant 2 : index
    %c0_26 = arith.constant 0 : index
    %c0_27 = arith.constant 0 : index
    %38 = vector.load %arg5[%c0_25, %c2, %c0_26, %c0_27] : memref<4x3x8x16xbf16, #tpu.memory_space<vmem>>, vector<1x1x8x16xbf16>
    %39 = vector.shape_cast %38 : vector<1x1x8x16xbf16> to vector<8x16xbf16>
    %cst_28 = arith.constant dense<0.000000e+00> : vector<32x16xf32>
    %40 = tpu.matmul %30, %39, %cst_28 {dimension_numbers = #tpu.dot_dimension_numbers<[1], [0], [0], [1], [0, 0, 1, 1], [], []>} : vector<32x8xbf16>, vector<8x16xbf16>, vector<32x16xf32> -> vector<32x16xf32>
    %41 = arith.addf %37, %40 : vector<32x16xf32>
    %42 = vector.broadcast %14 : vector<1x16xf32> to vector<32x16xf32>
    %43 = arith.addf %41, %42 : vector<32x16xf32>
    %44 = vector.extract_strided_slice %43 {offsets = [0, 0], sizes = [32, 8], strides = [1, 1]} : vector<32x16xf32> to vector<32x8xf32>
    %45 = math.tanh %44 : vector<32x8xf32>
    %46 = vector.extract_strided_slice %43 {offsets = [0, 8], sizes = [32, 8], strides = [1, 1]} : vector<32x16xf32> to vector<32x8xf32>
    %47 = arith.negf %46 : vector<32x8xf32>
    %48 = math.exp %47 : vector<32x8xf32>
    %cst_29 = arith.constant 1.000000e+00 : f32
    %49 = vector.broadcast %cst_29 : f32 to vector<32x8xf32>
    %50 = arith.addf %49, %48 : vector<32x8xf32>
    %51 = arith.divf %49, %50 : vector<32x8xf32>
    %52 = arith.mulf %45, %51 : vector<32x8xf32>
    %53 = arith.truncf %52 : vector<32x8xf32> to vector<32x8xbf16>
    %c0_30 = arith.constant 0 : index
    %c0_31 = arith.constant 0 : index
    %c0_32 = arith.constant 0 : index
    %54 = vector.load %arg7[%c0_30, %c0_31, %c0_32] : memref<4x8x16xbf16, #tpu.memory_space<vmem>>, vector<1x8x16xbf16>
    %55 = vector.shape_cast %54 : vector<1x8x16xbf16> to vector<8x16xbf16>
    %cst_33 = arith.constant dense<0.000000e+00> : vector<32x16xf32>
    %56 = tpu.matmul %53, %55, %cst_33 {dimension_numbers = #tpu.dot_dimension_numbers<[1], [0], [0], [1], [0, 0, 1, 1], [], []>} : vector<32x8xbf16>, vector<8x16xbf16>, vector<32x16xf32> -> vector<32x16xf32>
    %c0_34 = arith.constant 0 : index
    %c0_35 = arith.constant 0 : index
    %c0_36 = arith.constant 0 : index
    %57 = vector.load %arg8[%c0_34, %c0_35, %c0_36] : memref<4x1x16xf32, #tpu.memory_space<vmem>>, vector<1x1x16xf32>
    %58 = vector.shape_cast %57 : vector<1x1x16xf32> to vector<1x16xf32>
    %59 = vector.broadcast %58 : vector<1x16xf32> to vector<32x16xf32>
    %60 = arith.addf %56, %59 : vector<32x16xf32>
    %cst_37 = arith.constant 0.707106769 : f32
    %61 = vector.broadcast %cst_37 : f32 to vector<32x8xf32>
    %62 = arith.mulf %9, %61 : vector<32x8xf32>
    %63 = vector.extract_strided_slice %60 {offsets = [0, 0], sizes = [32, 8], strides = [1, 1]} : vector<32x16xf32> to vector<32x8xf32>
    %64 = arith.addf %62, %63 : vector<32x8xf32>
    %65 = vector.extract_strided_slice %60 {offsets = [0, 8], sizes = [32, 8], strides = [1, 1]} : vector<32x16xf32> to vector<32x8xf32>
    %66 = arith.addf %11, %65 : vector<32x8xf32>
    %67 = arith.truncf %64 : vector<32x8xf32> to vector<32x8xbf16>
    %c1_38 = arith.constant 1 : index
    %c0_39 = arith.constant 0 : index
    %c0_40 = arith.constant 0 : index
    %68 = vector.load %arg6[%c1_38, %c0_39, %c0_40] : memref<4x1x16xf32, #tpu.memory_space<vmem>>, vector<1x1x16xf32>
    %69 = vector.shape_cast %68 : vector<1x1x16xf32> to vector<1x16xf32>
    %c2_i32 = arith.constant 2 : i32
    %70 = vector.broadcast %c2_i32 : i32 to vector<32x1xi32>
    %71 = arith.cmpi sge, %10, %70 : vector<32x1xi32>
    %c14_i32 = arith.constant 14 : i32
    %72 = vector.broadcast %c14_i32 : i32 to vector<32x1xi32>
    %73 = arith.cmpi slt, %10, %72 : vector<32x1xi32>
    %c2_i32_41 = arith.constant 2 : i32
    %74 = tpu.dynamic_rotate %64 by %c2_i32_41 dim 0 : vector<32x8xf32>, i32 -> vector<32x8xf32>
    %cst_42 = arith.constant 0.000000e+00 : f32
    %75 = vector.shape_cast %71 : vector<32x1xi1> to vector<32x1xi1>
    %76 = vector.broadcast %75 : vector<32x1xi1> to vector<32x8xi1>
    %77 = vector.broadcast %cst_42 : f32 to vector<32x8xf32>
    %78 = arith.select %76, %74, %77 : vector<32x8xi1>, vector<32x8xf32>
    %79 = arith.truncf %78 : vector<32x8xf32> to vector<32x8xbf16>
    %c30_i32 = arith.constant 30 : i32
    %80 = tpu.dynamic_rotate %64 by %c30_i32 dim 0 : vector<32x8xf32>, i32 -> vector<32x8xf32>
    %cst_43 = arith.constant 0.000000e+00 : f32
    %81 = vector.shape_cast %73 : vector<32x1xi1> to vector<32x1xi1>
    %82 = vector.broadcast %81 : vector<32x1xi1> to vector<32x8xi1>
    %83 = vector.broadcast %cst_43 : f32 to vector<32x8xf32>
    %84 = arith.select %82, %80, %83 : vector<32x8xi1>, vector<32x8xf32>
    %85 = arith.truncf %84 : vector<32x8xf32> to vector<32x8xbf16>
    %c1_44 = arith.constant 1 : index
    %c0_45 = arith.constant 0 : index
    %c0_46 = arith.constant 0 : index
    %c0_47 = arith.constant 0 : index
    %86 = vector.load %arg5[%c1_44, %c0_45, %c0_46, %c0_47] : memref<4x3x8x16xbf16, #tpu.memory_space<vmem>>, vector<1x1x8x16xbf16>
    %87 = vector.shape_cast %86 : vector<1x1x8x16xbf16> to vector<8x16xbf16>
    %cst_48 = arith.constant dense<0.000000e+00> : vector<32x16xf32>
    %88 = tpu.matmul %79, %87, %cst_48 {dimension_numbers = #tpu.dot_dimension_numbers<[1], [0], [0], [1], [0, 0, 1, 1], [], []>} : vector<32x8xbf16>, vector<8x16xbf16>, vector<32x16xf32> -> vector<32x16xf32>
    %c1_49 = arith.constant 1 : index
    %c1_50 = arith.constant 1 : index
    %c0_51 = arith.constant 0 : index
    %c0_52 = arith.constant 0 : index
    %89 = vector.load %arg5[%c1_49, %c1_50, %c0_51, %c0_52] : memref<4x3x8x16xbf16, #tpu.memory_space<vmem>>, vector<1x1x8x16xbf16>
    %90 = vector.shape_cast %89 : vector<1x1x8x16xbf16> to vector<8x16xbf16>
    %cst_53 = arith.constant dense<0.000000e+00> : vector<32x16xf32>
    %91 = tpu.matmul %67, %90, %cst_53 {dimension_numbers = #tpu.dot_dimension_numbers<[1], [0], [0], [1], [0, 0, 1, 1], [], []>} : vector<32x8xbf16>, vector<8x16xbf16>, vector<32x16xf32> -> vector<32x16xf32>
    %92 = arith.addf %88, %91 : vector<32x16xf32>
    %c1_54 = arith.constant 1 : index
    %c2_55 = arith.constant 2 : index
    %c0_56 = arith.constant 0 : index
    %c0_57 = arith.constant 0 : index
    %93 = vector.load %arg5[%c1_54, %c2_55, %c0_56, %c0_57] : memref<4x3x8x16xbf16, #tpu.memory_space<vmem>>, vector<1x1x8x16xbf16>
    %94 = vector.shape_cast %93 : vector<1x1x8x16xbf16> to vector<8x16xbf16>
    %cst_58 = arith.constant dense<0.000000e+00> : vector<32x16xf32>
    %95 = tpu.matmul %85, %94, %cst_58 {dimension_numbers = #tpu.dot_dimension_numbers<[1], [0], [0], [1], [0, 0, 1, 1], [], []>} : vector<32x8xbf16>, vector<8x16xbf16>, vector<32x16xf32> -> vector<32x16xf32>
    %96 = arith.addf %92, %95 : vector<32x16xf32>
    %97 = vector.broadcast %69 : vector<1x16xf32> to vector<32x16xf32>
    %98 = arith.addf %96, %97 : vector<32x16xf32>
    %99 = vector.extract_strided_slice %98 {offsets = [0, 0], sizes = [32, 8], strides = [1, 1]} : vector<32x16xf32> to vector<32x8xf32>
    %100 = math.tanh %99 : vector<32x8xf32>
    %101 = vector.extract_strided_slice %98 {offsets = [0, 8], sizes = [32, 8], strides = [1, 1]} : vector<32x16xf32> to vector<32x8xf32>
    %102 = arith.negf %101 : vector<32x8xf32>
    %103 = math.exp %102 : vector<32x8xf32>
    %cst_59 = arith.constant 1.000000e+00 : f32
    %104 = vector.broadcast %cst_59 : f32 to vector<32x8xf32>
    %105 = arith.addf %104, %103 : vector<32x8xf32>
    %106 = arith.divf %104, %105 : vector<32x8xf32>
    %107 = arith.mulf %100, %106 : vector<32x8xf32>
    %108 = arith.truncf %107 : vector<32x8xf32> to vector<32x8xbf16>
    %c1_60 = arith.constant 1 : index
    %c0_61 = arith.constant 0 : index
    %c0_62 = arith.constant 0 : index
    %109 = vector.load %arg7[%c1_60, %c0_61, %c0_62] : memref<4x8x16xbf16, #tpu.memory_space<vmem>>, vector<1x8x16xbf16>
    %110 = vector.shape_cast %109 : vector<1x8x16xbf16> to vector<8x16xbf16>
    %cst_63 = arith.constant dense<0.000000e+00> : vector<32x16xf32>
    %111 = tpu.matmul %108, %110, %cst_63 {dimension_numbers = #tpu.dot_dimension_numbers<[1], [0], [0], [1], [0, 0, 1, 1], [], []>} : vector<32x8xbf16>, vector<8x16xbf16>, vector<32x16xf32> -> vector<32x16xf32>
    %c1_64 = arith.constant 1 : index
    %c0_65 = arith.constant 0 : index
    %c0_66 = arith.constant 0 : index
    %112 = vector.load %arg8[%c1_64, %c0_65, %c0_66] : memref<4x1x16xf32, #tpu.memory_space<vmem>>, vector<1x1x16xf32>
    %113 = vector.shape_cast %112 : vector<1x1x16xf32> to vector<1x16xf32>
    %114 = vector.broadcast %113 : vector<1x16xf32> to vector<32x16xf32>
    %115 = arith.addf %111, %114 : vector<32x16xf32>
    %cst_67 = arith.constant 0.707106769 : f32
    %116 = vector.broadcast %cst_67 : f32 to vector<32x8xf32>
    %117 = arith.mulf %64, %116 : vector<32x8xf32>
    %118 = vector.extract_strided_slice %115 {offsets = [0, 0], sizes = [32, 8], strides = [1, 1]} : vector<32x16xf32> to vector<32x8xf32>
    %119 = arith.addf %117, %118 : vector<32x8xf32>
    %120 = vector.extract_strided_slice %115 {offsets = [0, 8], sizes = [32, 8], strides = [1, 1]} : vector<32x16xf32> to vector<32x8xf32>
    %121 = arith.addf %66, %120 : vector<32x8xf32>
    %122 = arith.truncf %119 : vector<32x8xf32> to vector<32x8xbf16>
    %c2_68 = arith.constant 2 : index
    %c0_69 = arith.constant 0 : index
    %c0_70 = arith.constant 0 : index
    %123 = vector.load %arg6[%c2_68, %c0_69, %c0_70] : memref<4x1x16xf32, #tpu.memory_space<vmem>>, vector<1x1x16xf32>
    %124 = vector.shape_cast %123 : vector<1x1x16xf32> to vector<1x16xf32>
    %c1_i32_71 = arith.constant 1 : i32
    %125 = tpu.dynamic_rotate %119 by %c1_i32_71 dim 0 : vector<32x8xf32>, i32 -> vector<32x8xf32>
    %cst_72 = arith.constant 0.000000e+00 : f32
    %126 = vector.shape_cast %16 : vector<32x1xi1> to vector<32x1xi1>
    %127 = vector.broadcast %126 : vector<32x1xi1> to vector<32x8xi1>
    %128 = vector.broadcast %cst_72 : f32 to vector<32x8xf32>
    %129 = arith.select %127, %125, %128 : vector<32x8xi1>, vector<32x8xf32>
    %130 = arith.truncf %129 : vector<32x8xf32> to vector<32x8xbf16>
    %c31_i32_73 = arith.constant 31 : i32
    %131 = tpu.dynamic_rotate %119 by %c31_i32_73 dim 0 : vector<32x8xf32>, i32 -> vector<32x8xf32>
    %cst_74 = arith.constant 0.000000e+00 : f32
    %132 = vector.shape_cast %18 : vector<32x1xi1> to vector<32x1xi1>
    %133 = vector.broadcast %132 : vector<32x1xi1> to vector<32x8xi1>
    %134 = vector.broadcast %cst_74 : f32 to vector<32x8xf32>
    %135 = arith.select %133, %131, %134 : vector<32x8xi1>, vector<32x8xf32>
    %136 = arith.truncf %135 : vector<32x8xf32> to vector<32x8xbf16>
    %c2_75 = arith.constant 2 : index
    %c0_76 = arith.constant 0 : index
    %c0_77 = arith.constant 0 : index
    %c0_78 = arith.constant 0 : index
    %137 = vector.load %arg5[%c2_75, %c0_76, %c0_77, %c0_78] : memref<4x3x8x16xbf16, #tpu.memory_space<vmem>>, vector<1x1x8x16xbf16>
    %138 = vector.shape_cast %137 : vector<1x1x8x16xbf16> to vector<8x16xbf16>
    %cst_79 = arith.constant dense<0.000000e+00> : vector<32x16xf32>
    %139 = tpu.matmul %130, %138, %cst_79 {dimension_numbers = #tpu.dot_dimension_numbers<[1], [0], [0], [1], [0, 0, 1, 1], [], []>} : vector<32x8xbf16>, vector<8x16xbf16>, vector<32x16xf32> -> vector<32x16xf32>
    %c2_80 = arith.constant 2 : index
    %c1_81 = arith.constant 1 : index
    %c0_82 = arith.constant 0 : index
    %c0_83 = arith.constant 0 : index
    %140 = vector.load %arg5[%c2_80, %c1_81, %c0_82, %c0_83] : memref<4x3x8x16xbf16, #tpu.memory_space<vmem>>, vector<1x1x8x16xbf16>
    %141 = vector.shape_cast %140 : vector<1x1x8x16xbf16> to vector<8x16xbf16>
    %cst_84 = arith.constant dense<0.000000e+00> : vector<32x16xf32>
    %142 = tpu.matmul %122, %141, %cst_84 {dimension_numbers = #tpu.dot_dimension_numbers<[1], [0], [0], [1], [0, 0, 1, 1], [], []>} : vector<32x8xbf16>, vector<8x16xbf16>, vector<32x16xf32> -> vector<32x16xf32>
    %143 = arith.addf %139, %142 : vector<32x16xf32>
    %c2_85 = arith.constant 2 : index
    %c2_86 = arith.constant 2 : index
    %c0_87 = arith.constant 0 : index
    %c0_88 = arith.constant 0 : index
    %144 = vector.load %arg5[%c2_85, %c2_86, %c0_87, %c0_88] : memref<4x3x8x16xbf16, #tpu.memory_space<vmem>>, vector<1x1x8x16xbf16>
    %145 = vector.shape_cast %144 : vector<1x1x8x16xbf16> to vector<8x16xbf16>
    %cst_89 = arith.constant dense<0.000000e+00> : vector<32x16xf32>
    %146 = tpu.matmul %136, %145, %cst_89 {dimension_numbers = #tpu.dot_dimension_numbers<[1], [0], [0], [1], [0, 0, 1, 1], [], []>} : vector<32x8xbf16>, vector<8x16xbf16>, vector<32x16xf32> -> vector<32x16xf32>
    %147 = arith.addf %143, %146 : vector<32x16xf32>
    %148 = vector.broadcast %124 : vector<1x16xf32> to vector<32x16xf32>
    %149 = arith.addf %147, %148 : vector<32x16xf32>
    %150 = vector.extract_strided_slice %149 {offsets = [0, 0], sizes = [32, 8], strides = [1, 1]} : vector<32x16xf32> to vector<32x8xf32>
    %151 = math.tanh %150 : vector<32x8xf32>
    %152 = vector.extract_strided_slice %149 {offsets = [0, 8], sizes = [32, 8], strides = [1, 1]} : vector<32x16xf32> to vector<32x8xf32>
    %153 = arith.negf %152 : vector<32x8xf32>
    %154 = math.exp %153 : vector<32x8xf32>
    %cst_90 = arith.constant 1.000000e+00 : f32
    %155 = vector.broadcast %cst_90 : f32 to vector<32x8xf32>
    %156 = arith.addf %155, %154 : vector<32x8xf32>
    %157 = arith.divf %155, %156 : vector<32x8xf32>
    %158 = arith.mulf %151, %157 : vector<32x8xf32>
    %159 = arith.truncf %158 : vector<32x8xf32> to vector<32x8xbf16>
    %c2_91 = arith.constant 2 : index
    %c0_92 = arith.constant 0 : index
    %c0_93 = arith.constant 0 : index
    %160 = vector.load %arg7[%c2_91, %c0_92, %c0_93] : memref<4x8x16xbf16, #tpu.memory_space<vmem>>, vector<1x8x16xbf16>
    %161 = vector.shape_cast %160 : vector<1x8x16xbf16> to vector<8x16xbf16>
    %cst_94 = arith.constant dense<0.000000e+00> : vector<32x16xf32>
    %162 = tpu.matmul %159, %161, %cst_94 {dimension_numbers = #tpu.dot_dimension_numbers<[1], [0], [0], [1], [0, 0, 1, 1], [], []>} : vector<32x8xbf16>, vector<8x16xbf16>, vector<32x16xf32> -> vector<32x16xf32>
    %c2_95 = arith.constant 2 : index
    %c0_96 = arith.constant 0 : index
    %c0_97 = arith.constant 0 : index
    %163 = vector.load %arg8[%c2_95, %c0_96, %c0_97] : memref<4x1x16xf32, #tpu.memory_space<vmem>>, vector<1x1x16xf32>
    %164 = vector.shape_cast %163 : vector<1x1x16xf32> to vector<1x16xf32>
    %165 = vector.broadcast %164 : vector<1x16xf32> to vector<32x16xf32>
    %166 = arith.addf %162, %165 : vector<32x16xf32>
    %cst_98 = arith.constant 0.707106769 : f32
    %167 = vector.broadcast %cst_98 : f32 to vector<32x8xf32>
    %168 = arith.mulf %119, %167 : vector<32x8xf32>
    %169 = vector.extract_strided_slice %166 {offsets = [0, 0], sizes = [32, 8], strides = [1, 1]} : vector<32x16xf32> to vector<32x8xf32>
    %170 = arith.addf %168, %169 : vector<32x8xf32>
    %171 = vector.extract_strided_slice %166 {offsets = [0, 8], sizes = [32, 8], strides = [1, 1]} : vector<32x16xf32> to vector<32x8xf32>
    %172 = arith.addf %121, %171 : vector<32x8xf32>
    %173 = arith.truncf %170 : vector<32x8xf32> to vector<32x8xbf16>
    %c3 = arith.constant 3 : index
    %c0_99 = arith.constant 0 : index
    %c0_100 = arith.constant 0 : index
    %174 = vector.load %arg6[%c3, %c0_99, %c0_100] : memref<4x1x16xf32, #tpu.memory_space<vmem>>, vector<1x1x16xf32>
    %175 = vector.shape_cast %174 : vector<1x1x16xf32> to vector<1x16xf32>
    %c2_i32_101 = arith.constant 2 : i32
    %176 = tpu.dynamic_rotate %170 by %c2_i32_101 dim 0 : vector<32x8xf32>, i32 -> vector<32x8xf32>
    %cst_102 = arith.constant 0.000000e+00 : f32
    %177 = vector.shape_cast %71 : vector<32x1xi1> to vector<32x1xi1>
    %178 = vector.broadcast %177 : vector<32x1xi1> to vector<32x8xi1>
    %179 = vector.broadcast %cst_102 : f32 to vector<32x8xf32>
    %180 = arith.select %178, %176, %179 : vector<32x8xi1>, vector<32x8xf32>
    %181 = arith.truncf %180 : vector<32x8xf32> to vector<32x8xbf16>
    %c30_i32_103 = arith.constant 30 : i32
    %182 = tpu.dynamic_rotate %170 by %c30_i32_103 dim 0 : vector<32x8xf32>, i32 -> vector<32x8xf32>
    %cst_104 = arith.constant 0.000000e+00 : f32
    %183 = vector.shape_cast %73 : vector<32x1xi1> to vector<32x1xi1>
    %184 = vector.broadcast %183 : vector<32x1xi1> to vector<32x8xi1>
    %185 = vector.broadcast %cst_104 : f32 to vector<32x8xf32>
    %186 = arith.select %184, %182, %185 : vector<32x8xi1>, vector<32x8xf32>
    %187 = arith.truncf %186 : vector<32x8xf32> to vector<32x8xbf16>
    %c3_105 = arith.constant 3 : index
    %c0_106 = arith.constant 0 : index
    %c0_107 = arith.constant 0 : index
    %c0_108 = arith.constant 0 : index
    %188 = vector.load %arg5[%c3_105, %c0_106, %c0_107, %c0_108] : memref<4x3x8x16xbf16, #tpu.memory_space<vmem>>, vector<1x1x8x16xbf16>
    %189 = vector.shape_cast %188 : vector<1x1x8x16xbf16> to vector<8x16xbf16>
    %cst_109 = arith.constant dense<0.000000e+00> : vector<32x16xf32>
    %190 = tpu.matmul %181, %189, %cst_109 {dimension_numbers = #tpu.dot_dimension_numbers<[1], [0], [0], [1], [0, 0, 1, 1], [], []>} : vector<32x8xbf16>, vector<8x16xbf16>, vector<32x16xf32> -> vector<32x16xf32>
    %c3_110 = arith.constant 3 : index
    %c1_111 = arith.constant 1 : index
    %c0_112 = arith.constant 0 : index
    %c0_113 = arith.constant 0 : index
    %191 = vector.load %arg5[%c3_110, %c1_111, %c0_112, %c0_113] : memref<4x3x8x16xbf16, #tpu.memory_space<vmem>>, vector<1x1x8x16xbf16>
    %192 = vector.shape_cast %191 : vector<1x1x8x16xbf16> to vector<8x16xbf16>
    %cst_114 = arith.constant dense<0.000000e+00> : vector<32x16xf32>
    %193 = tpu.matmul %173, %192, %cst_114 {dimension_numbers = #tpu.dot_dimension_numbers<[1], [0], [0], [1], [0, 0, 1, 1], [], []>} : vector<32x8xbf16>, vector<8x16xbf16>, vector<32x16xf32> -> vector<32x16xf32>
    %194 = arith.addf %190, %193 : vector<32x16xf32>
    %c3_115 = arith.constant 3 : index
    %c2_116 = arith.constant 2 : index
    %c0_117 = arith.constant 0 : index
    %c0_118 = arith.constant 0 : index
    %195 = vector.load %arg5[%c3_115, %c2_116, %c0_117, %c0_118] : memref<4x3x8x16xbf16, #tpu.memory_space<vmem>>, vector<1x1x8x16xbf16>
    %196 = vector.shape_cast %195 : vector<1x1x8x16xbf16> to vector<8x16xbf16>
    %cst_119 = arith.constant dense<0.000000e+00> : vector<32x16xf32>
    %197 = tpu.matmul %187, %196, %cst_119 {dimension_numbers = #tpu.dot_dimension_numbers<[1], [0], [0], [1], [0, 0, 1, 1], [], []>} : vector<32x8xbf16>, vector<8x16xbf16>, vector<32x16xf32> -> vector<32x16xf32>
    %198 = arith.addf %194, %197 : vector<32x16xf32>
    %199 = vector.broadcast %175 : vector<1x16xf32> to vector<32x16xf32>
    %200 = arith.addf %198, %199 : vector<32x16xf32>
    %201 = vector.extract_strided_slice %200 {offsets = [0, 0], sizes = [32, 8], strides = [1, 1]} : vector<32x16xf32> to vector<32x8xf32>
    %202 = math.tanh %201 : vector<32x8xf32>
    %203 = vector.extract_strided_slice %200 {offsets = [0, 8], sizes = [32, 8], strides = [1, 1]} : vector<32x16xf32> to vector<32x8xf32>
    %204 = arith.negf %203 : vector<32x8xf32>
    %205 = math.exp %204 : vector<32x8xf32>
    %cst_120 = arith.constant 1.000000e+00 : f32
    %206 = vector.broadcast %cst_120 : f32 to vector<32x8xf32>
    %207 = arith.addf %206, %205 : vector<32x8xf32>
    %208 = arith.divf %206, %207 : vector<32x8xf32>
    %209 = arith.mulf %202, %208 : vector<32x8xf32>
    %210 = arith.truncf %209 : vector<32x8xf32> to vector<32x8xbf16>
    %c3_121 = arith.constant 3 : index
    %c0_122 = arith.constant 0 : index
    %c0_123 = arith.constant 0 : index
    %211 = vector.load %arg7[%c3_121, %c0_122, %c0_123] : memref<4x8x16xbf16, #tpu.memory_space<vmem>>, vector<1x8x16xbf16>
    %212 = vector.shape_cast %211 : vector<1x8x16xbf16> to vector<8x16xbf16>
    %cst_124 = arith.constant dense<0.000000e+00> : vector<32x16xf32>
    %213 = tpu.matmul %210, %212, %cst_124 {dimension_numbers = #tpu.dot_dimension_numbers<[1], [0], [0], [1], [0, 0, 1, 1], [], []>} : vector<32x8xbf16>, vector<8x16xbf16>, vector<32x16xf32> -> vector<32x16xf32>
    %c3_125 = arith.constant 3 : index
    %c0_126 = arith.constant 0 : index
    %c0_127 = arith.constant 0 : index
    %214 = vector.load %arg8[%c3_125, %c0_126, %c0_127] : memref<4x1x16xf32, #tpu.memory_space<vmem>>, vector<1x1x16xf32>
    %215 = vector.shape_cast %214 : vector<1x1x16xf32> to vector<1x16xf32>
    %216 = vector.broadcast %215 : vector<1x16xf32> to vector<32x16xf32>
    %217 = arith.addf %213, %216 : vector<32x16xf32>
    %218 = vector.extract_strided_slice %217 {offsets = [0, 8], sizes = [32, 8], strides = [1, 1]} : vector<32x16xf32> to vector<32x8xf32>
    %219 = arith.addf %172, %218 : vector<32x8xf32>
    %220 = arith.truncf %219 : vector<32x8xf32> to vector<32x8xbf16>
    %c0_128 = arith.constant 0 : index
    %c0_129 = arith.constant 0 : index
    %221 = vector.load %arg9[%c0_128, %c0_129] : memref<8x8xbf16, #tpu.memory_space<vmem>>, vector<8x8xbf16>
    %cst_130 = arith.constant dense<0.000000e+00> : vector<32x8xf32>
    %222 = tpu.matmul %220, %221, %cst_130 {dimension_numbers = #tpu.dot_dimension_numbers<[1], [0], [0], [1], [0, 0, 1, 1], [], []>} : vector<32x8xbf16>, vector<8x8xbf16>, vector<32x8xf32> -> vector<32x8xf32>
    %c0_131 = arith.constant 0 : index
    %c0_132 = arith.constant 0 : index
    %223 = vector.load %arg10[%c0_131, %c0_132] : memref<1x8xf32, #tpu.memory_space<vmem>>, vector<1x8xf32>
    %224 = vector.broadcast %223 : vector<1x8xf32> to vector<32x8xf32>
    %225 = arith.addf %222, %224 : vector<32x8xf32>
    %cst_133 = arith.constant 0.000000e+00 : f32
    %226 = vector.broadcast %cst_133 : f32 to vector<32x8xf32>
    %227 = arith.maximumf %225, %226 : vector<32x8xf32>
    %228 = arith.truncf %227 : vector<32x8xf32> to vector<32x8xbf16>
    %c0_134 = arith.constant 0 : index
    %c0_135 = arith.constant 0 : index
    %229 = vector.load %arg11[%c0_134, %c0_135] : memref<8x128xbf16, #tpu.memory_space<vmem>>, vector<8x128xbf16>
    %cst_136 = arith.constant dense<0.000000e+00> : vector<32x128xf32>
    %230 = tpu.matmul %228, %229, %cst_136 {dimension_numbers = #tpu.dot_dimension_numbers<[1], [0], [0], [1], [0, 0, 1, 1], [], []>} : vector<32x8xbf16>, vector<8x128xbf16>, vector<32x128xf32> -> vector<32x128xf32>
    %c0_137 = arith.constant 0 : index
    %c0_138 = arith.constant 0 : index
    %231 = vector.load %arg12[%c0_137, %c0_138] : memref<1x128xf32, #tpu.memory_space<vmem>>, vector<1x128xf32>
    %232 = vector.broadcast %231 : vector<1x128xf32> to vector<32x128xf32>
    %233 = arith.addf %230, %232 : vector<32x128xf32>
    %234 = vector.shape_cast %233 : vector<32x128xf32> to vector<2x16x128xf32>
    %c0_139 = arith.constant 0 : index
    %c0_140 = arith.constant 0 : index
    %c0_141 = arith.constant 0 : index
    %235 = vector.load %arg13[%c0_139, %c0_140, %c0_141] : memref<2x16x128xf32, #tpu.memory_space<vmem>>, vector<2x16x128xf32>
    tpu.vector_store %arg13[%c0_139, %c0_140, %c0_141], %234 {strides = array<i32>} : memref<2x16x128xf32, #tpu.memory_space<vmem>>, vector<2x16x128xf32>,
    return
  }
  func.func @transform_0(%arg0: i32) -> (i32, i32, i32) {
    %c0_i32 = arith.constant 0 : i32
    %c0_i32_0 = arith.constant 0 : i32
    %c0_i32_1 = arith.constant 0 : i32
    return %arg0, %c0_i32, %c0_i32_0 : i32, i32, i32
  }
  func.func @transform_1(%arg0: i32) -> (i32, i32) {
    %c0_i32 = arith.constant 0 : i32
    %c0_i32_0 = arith.constant 0 : i32
    %c0_i32_1 = arith.constant 0 : i32
    return %c0_i32, %c0_i32_0 : i32, i32
  }
  func.func @transform_2(%arg0: i32) -> (i32, i32) {
    %c0_i32 = arith.constant 0 : i32
    %c0_i32_0 = arith.constant 0 : i32
    %c0_i32_1 = arith.constant 0 : i32
    return %c0_i32, %c0_i32_0 : i32, i32
  }
  func.func @transform_3(%arg0: i32) -> (i32, i32) {
    %c0_i32 = arith.constant 0 : i32
    %c0_i32_0 = arith.constant 0 : i32
    %c0_i32_1 = arith.constant 0 : i32
    return %c0_i32, %c0_i32_0 : i32, i32
  }
  func.func @transform_4(%arg0: i32) -> (i32, i32, i32, i32) {
    %c0_i32 = arith.constant 0 : i32
    %c0_i32_0 = arith.constant 0 : i32
    %c0_i32_1 = arith.constant 0 : i32
    %c0_i32_2 = arith.constant 0 : i32
    %c0_i32_3 = arith.constant 0 : i32
    return %c0_i32, %c0_i32_0, %c0_i32_1, %c0_i32_2 : i32, i32, i32, i32
  }
  func.func @transform_5(%arg0: i32) -> (i32, i32, i32) {
    %c0_i32 = arith.constant 0 : i32
    %c0_i32_0 = arith.constant 0 : i32
    %c0_i32_1 = arith.constant 0 : i32
    %c0_i32_2 = arith.constant 0 : i32
    return %c0_i32, %c0_i32_0, %c0_i32_1 : i32, i32, i32
  }
  func.func @transform_6(%arg0: i32) -> (i32, i32, i32) {
    %c0_i32 = arith.constant 0 : i32
    %c0_i32_0 = arith.constant 0 : i32
    %c0_i32_1 = arith.constant 0 : i32
    %c0_i32_2 = arith.constant 0 : i32
    return %c0_i32, %c0_i32_0, %c0_i32_1 : i32, i32, i32
  }
  func.func @transform_7(%arg0: i32) -> (i32, i32, i32) {
    %c0_i32 = arith.constant 0 : i32
    %c0_i32_0 = arith.constant 0 : i32
    %c0_i32_1 = arith.constant 0 : i32
    %c0_i32_2 = arith.constant 0 : i32
    return %c0_i32, %c0_i32_0, %c0_i32_1 : i32, i32, i32
  }
  func.func @transform_8(%arg0: i32) -> (i32, i32) {
    %c0_i32 = arith.constant 0 : i32
    %c0_i32_0 = arith.constant 0 : i32
    %c0_i32_1 = arith.constant 0 : i32
    return %c0_i32, %c0_i32_0 : i32, i32
  }
  func.func @transform_9(%arg0: i32) -> (i32, i32) {
    %c0_i32 = arith.constant 0 : i32
    %c0_i32_0 = arith.constant 0 : i32
    %c0_i32_1 = arith.constant 0 : i32
    return %c0_i32, %c0_i32_0 : i32, i32
  }
  func.func @transform_10(%arg0: i32) -> (i32, i32) {
    %c0_i32 = arith.constant 0 : i32
    %c0_i32_0 = arith.constant 0 : i32
    %c0_i32_1 = arith.constant 0 : i32
    return %c0_i32, %c0_i32_0 : i32, i32
  }
  func.func @transform_11(%arg0: i32) -> (i32, i32) {
    %c0_i32 = arith.constant 0 : i32
    %c0_i32_0 = arith.constant 0 : i32
    %c0_i32_1 = arith.constant 0 : i32
    return %c0_i32, %c0_i32_0 : i32, i32
  }
  func.func @transform_12(%arg0: i32) -> (i32, i32, i32) {
    %c0_i32 = arith.constant 0 : i32
    %c0_i32_0 = arith.constant 0 : i32
    %c0_i32_1 = arith.constant 0 : i32
    return %arg0, %c0_i32, %c0_i32_0 : i32, i32, i32
  }
}

</mosaic_0001>

<bundles_post_ra>
// kernel: tpu_custom_call.1
= control target key start
LH: loop header
LB: loop body
LE: loop exit
PB: predicated region body
PF: predicated region fallthrough
CT: control target
= control target key end

     0   :  { %vm64_vm0 = vcmask 1041408   ;;  %vm57_vm1 = vcmask 31744   ;;  %v2241_v9 = vmov 0   ;;  %s2873_s0 = inlined_call_operand.vmem [shape: f32[2,16,4], index: 0, kind: input, shape index: {}]   ;;  %s2874_s1 = inlined_call_operand.vmem [shape: s32[32,1], index: 1, kind: input, shape index: {}]   ;;  %s2875_s2 = inlined_call_operand.vmem [shape: bf16[4,8], index: 2, kind: input, shape index: {}]   ;;  %s2876_s3 = inlined_call_operand.vmem [shape: f32[1,8], index: 3, kind: input, shape index: {}]   ;;  %s2877_s4 = inlined_call_operand.vmem [shape: bf16[4,3,8,16], index: 4, kind: input, shape index: {}]   ;;  %s2878_s5 = inlined_call_operand.vmem [shape: f32[4,1,16], index: 5, kind: input, shape index: {}]   ;;  %s2879_s6 = inlined_call_operand.vmem [shape: bf16[4,8,16], index: 6, kind: input, shape index: {}]   ;;  %s2880_s7 = inlined_call_operand.vmem [shape: f32[4,1,16], index: 7, kind: input, shape index: {}]   ;;  %s2881_s8 = inlined_call_operand.vmem [shape: bf16[8,8], index: 8, kind: input, shape index: {}]   ;;  %s2882_s9 = inlined_call_operand.vmem [shape: f32[1,8], index: 9, kind: input, shape index: {}]   ;;  %s2883_s10 = inlined_call_operand.vmem [shape: bf16[8,128], index: 10, kind: input, shape index: {}]   ;;  %s2884_s11 = inlined_call_operand.vmem [shape: f32[1,128], index: 11, kind: input, shape index: {}]   ;;  %s2885_s12 = inlined_call_operand.hbm [shape: f32[2,16,128], index: 12, kind: output, shape index: {}]  }
   0x1   :  { %v49_v0 = vld [vmem:[%s2875_s2] sm:$0x3]  ;;  %v44_v2 = vld [vmem:[%s2873_s0 + $0x8] sm:$0xff]  ;;  %v45_v5 = vld [vmem:[%s2873_s0 + $0x10] sm:$0xff]  ;;  %2120 = vset.pattern.permute.xlu1 %v2241_v9  ;;  %2119 = vset.pattern.permute.xlu0 %v2241_v9 }
   0x2   :  { %v43_v1 = vld [vmem:[%s2873_s0] sm:$0xff]  ;;  %2095 = vmatprep.subr.msk.bf16.mxu0 %vm64_vm0, %v49_v0  ;;  %v66_v3 = vsel %vm64_vm0, %v49_v0, 0  ;;  %v46_v6 = vld [vmem:[%s2873_s0 + $0x18] sm:$0xff]  ;;  %v2329_v7 = vld [vmem:[%s2874_s1 + $0x10] sm:$0xff] }
   0x3   :  { %v47_v4 = vpack.c.bf16 %v44_v2, %v43_v1  ;;  %1950 = vmatpush3.bf16.msra.mxu0 %v66_v3  ;;  %v48_v8 = vpack.c.bf16 %v46_v6, %v45_v5  ;;  %vm130_vm2 = vcmp.ge.s32.totalorder %v2329_v7, 1  ;;  %v2336_v10 = vld [vmem:[%s2874_s1] sm:$0xff]  ;;  %v2341_v11 = vld [vmem:[%s2874_s1 + $0x18] sm:$0xff]  ;;  %v2346_v12 = vld [vmem:[%s2874_s1 + $0x8] sm:$0xff] }
   0x4   :  { %v149_v13 = vsel %vm130_vm2, 1, %v2241_v9  ;;  %vm128_vm3 = vcmp.ge.s32.totalorder %v2336_v10, 1  ;;  %vm131_vm4 = vcmp.ge.s32.totalorder %v2341_v11, 1  ;;  %vm129_vm5 = vcmp.ge.s32.totalorder %v2346_v12, 1 }
   0x5   :  { %1951 = vmatprep.mubr.msk.bf16.mxu0 %vm57_vm1, %v47_v4 }
   0x6   :  { %17 = vsyncpa [#allocation3], 0  ;;  %158 = vperm.xlu1 %2120, %v149_v13   ;;  %v147_v14 = vsel %vm128_vm3, 1, %v2241_v9  ;;  %1952 = vmatmul.mubr.msk.bf16.vlgmr.msra.gmra.mrb[0].mxu0 %vm57_vm1, %v48_v8  ;;  %v150_v15 = vsel %vm131_vm4, 1, %v2241_v9  ;;  %v148_v16 = vsel %vm129_vm5, 1, %v2241_v9  ;;  %vm133_vm6 = vcmp.lt.s32.totalorder %v2346_v12, 15 }
   0x7   :  { %152 = vperm.xlu0 %2119, %v147_v14   ;;  %vm132_vm7 = vcmp.lt.s32.totalorder %v2336_v10, 15  ;;  %v183_v17 = vsel %vm133_vm6, 1, %v2241_v9  ;;  %vm135_vm8 = vcmp.lt.s32.totalorder %v2341_v11, 15  ;;  %vm134_vm9 = vcmp.lt.s32.totalorder %v2329_v7, 15  ;;  %v1810_v21 = vld [vmem:[%s2877_s4 + $0x4] sm:$0xf] }
   0x8   :  { %v182_v18 = vsel %vm132_vm7, 1, %v2241_v9  ;;  %v185_v19 = vsel %vm135_vm8, 1, %v2241_v9  ;;  %v184_v20 = vsel %vm134_vm9, 1, %v2241_v9  ;;  %vm218_vm10 = vcmask 1043456   ;;  %v208_v23 = vld [vmem:[%s2877_s4] sm:$0xf] }
   0x9   :  { %2096 = vmatprep.subr.msk.bf16.mxu1 %vm218_vm10, %v1810_v21  ;;  %v220_v22 = vsel %vm218_vm10, %v1810_v21, 0  ;;  %v140_v28 = vlaneseq  ;;  %v1807_v31 = vld [vmem:[%s2876_s3] ss:$0 sm:$0xff]  ;;  %vm211_vm13 = vcmask 64512   ;;  %v278_v39 = vsel %vm218_vm10, %v208_v23, 0  ;;  %s2242_s29 = smov 120  }
   0xa   :  { %161 = vperm.xlu1 %2120, %v150_v15   ;;  %1956 = vmatpush3.bf16.msra.mxu1 %v220_v22  ;;  %v1815_v2 = vld [vmem:[%s2877_s4 + $0x8] sm:$0xf]  ;;  %v1818_v21 = vld [vmem:[%s2878_s5] ss:$0 sm:$0xff]  ;;  %vm535_vm6 = vcmp.ge.s32.totalorder %v2336_v10, 2  ;;  %vm536_vm7 = vcmp.ge.s32.totalorder %v2346_v12, 2 }
   0xb   :  { %155 = vperm.xlu0 %2119, %v148_v16   ;;  %2097 = vmatprep.subr.msk.bf16.mxu1 %vm218_vm10, %v208_v23  ;;  %v2385_v30 = vshrl.u32 %v140_v28, 7  ;;  %vm537_vm8 = vcmp.ge.s32.totalorder %v2329_v7, 2  ;;  %vm538_vm9 = vcmp.ge.s32.totalorder %v2341_v11, 2 }
   0xd   :  { %vm142_vm11 = vcmp.lt.s32.totalorder %v2385_v30, 1  ;;  %vm177_vm12 = vcmp.lt.s32.totalorder %v2385_v30, 7 }
   0xe   :  { %190 = vperm.xlu1 %2120, %v183_v17  }
   0xf   :  { %187 = vperm.xlu0 %2119, %v182_v18  }
  0x12   :  { %196 = vperm.xlu1 %2120, %v185_v19  }
  0x13   :  { %193 = vperm.xlu0 %2119, %v184_v20   ;;  %v338_v20 = vsel %vm218_vm10, %v1815_v2, 0 }
  0x85   :  { %v2375_v24 = vpop.permute.xlu1 %158 }
  0x86   :  { %v2377_v25 = vpop.permute.xlu0 %152  ;;  %vm2890_vm14 = vcmp.eq.s32.totalorder %v2375_v24, 1 }
  0x87   :  { %vm163_vm15 = vcmp.eq.s32.totalorder %v2377_v25, 1 }
  0x89   :  { %v2379_v26 = vpop.permute.xlu1 %161 }
  0x8a   :  { %v2381_v27 = vpop.permute.xlu0 %155  ;;  %vm166_vm0 = vcmp.eq.s32.totalorder %v2379_v26, 1 }
  0x8b   :  { %vm2891_vm1 = vcmp.eq.s32.totalorder %v2381_v27, 1 }
  0x8d   :  { %v2383_v29 = vpop.permute.xlu1 %190 }
  0x8e   :  { %v2390_v32 = vpop.permute.xlu0 %187  ;;  %vm2888_vm2 = vcmp.eq.s32.totalorder %v2383_v29, 1 }
  0x8f   :  { %vm2889_vm3 = vcmp.eq.s32.totalorder %v2390_v32, 1 }
  0x91   :  { %v2394_v38 = vpop.permute.xlu1 %196 }
  0x92   :  { %vm2886_vm4 = vcmp.eq.s32.totalorder %v2394_v38, 1  ;;  %v2410_v46 = vpop.permute.xlu0 %193 }
  0x93   :  { %vm2887_vm5 = vcmp.eq.s32.totalorder %v2410_v46, 1 }
  0xd9   :  { %v1953_v33 = vpop.f32.mrb[0].mxu0 }
  0xda   :  { %v111_v34 = vadd.f32 %v1953_v33, %v1807_v31  ;;  %v102_v35 = vpop.f32.mrb[1].mxu0 }
  0xdb   :  { %v103_v36 = vadd.f32 %v1807_v31, %v102_v35  ;;  %v1954_v37 = vpop.f32.mrb[2].mxu0 }
  0xdc   :  { %v2399_v40 = vmax.f32 %v111_v34, 0.0  ;;  %v114_v41 = vadd.f32 %v1954_v37, %v1807_v31  ;;  %v105_v42 = vpop.f32.mrb[3].mxu0 }
  0xdd   :  { %v2403_v43 = vmax.f32 %v103_v36, 0.0  ;;  %v106_v44 = vadd.f32 %v1807_v31, %v105_v42 }
  0xde   :  { %v2405_v45 = vmax.f32 %v114_v41, 0.0  ;;  %v138_v47 = vrot.slane %v2399_v40, 7  ;;  %v175_v52 = vrot.slane %v2399_v40, 1 }
  0xdf   :  { %v136_v48 = vrot.slane %v2403_v43, 7  ;;  %v2414_v49 = vmax.f32 %v106_v44, 0.0  ;;  %v173_v50 = vrot.slane %v2403_v43, 1 }
  0xe0   :  { %v139_v51 = vrot.slane %v2405_v45, 7  ;;  %v176_v53 = vrot.slane %v2405_v45, 1  ;;  %v126_v54 = vpack.c.bf16 %v2405_v45, %v2399_v40 }
  0xe1   :  { %v137_v55 = vrot.slane %v2414_v49, 7  ;;  %v174_v56 = vrot.slane %v2414_v49, 1  ;;  %v125_v57 = vpack.c.bf16 %v2414_v49, %v2403_v43 }
  0xe2   :  { %v143_v58 = vsel %vm142_vm11, %v138_v47, %v139_v51  ;;  %v181_v59 = vsel %vm177_vm12, %v176_v53, %v173_v50  ;;  %v178_v60 = vsel %vm177_vm12, %v175_v52, %v176_v53  ;;  %v146_v61 = vsel %vm142_vm11, %v139_v51, %v136_v48 }
  0xe3   :  { %v144_v62 = vsel %vm142_vm11, %v137_v55, %v138_v47  ;;  %v179_v63 = vsel %vm177_vm12, %v174_v56, %v175_v52  ;;  %v180_v0 = vsel %vm177_vm12, %v173_v50, %v174_v56  ;;  %v205_v1 = vsel %vm2886_vm4, %v181_v59, 0.0  ;;  %1957 = vmatprep.mubr.msk.bf16.mxu1 %vm211_vm13, %v125_v57  ;;  %v453_v50 = vld [vmem:[%s2879_s6] sm:$0xf] }
  0xe4   :  { %v203_v3 = vsel %vm2888_vm2, %v179_v63, 0.0  ;;  %v202_v4 = vsel %vm2889_vm3, %v180_v0, 0.0  ;;  %v204_v5 = vsel %vm2887_vm5, %v178_v60, 0.0  ;;  %1958 = vmatmul.mubr.msk.bf16.vlgmr.msra.gmra.mrb[0].mxu1 %vm211_vm13, %v126_v54  ;;  %v145_v6 = vsel %vm142_vm11, %v136_v48, %v137_v55  ;;  %2099 = vmatprep.subr.msk.bf16.mxu0 %vm218_vm10, %v453_v50 }
  0xe5   :  { %v206_v8 = vpack.c.bf16 %v203_v3, %v202_v4  ;;  %v207_v13 = vpack.c.bf16 %v205_v1, %v204_v5  ;;  %1962 = vmatpush3.bf16.msra.mxu1 %v278_v39  ;;  %v167_v14 = vsel %vm163_vm15, %v146_v61, 0.0  ;;  %v168_v15 = vsel %vm2891_vm1, %v145_v6, 0.0 }
  0xe6   :  { %v171_v16 = vpack.c.bf16 %v168_v15, %v167_v14  ;;  %2098 = vmatprep.subr.msk.bf16.mxu1 %vm218_vm10, %v1815_v2  ;;  %v169_v17 = vsel %vm2890_vm14, %v144_v62, 0.0  ;;  %v170_v18 = vsel %vm166_vm0, %v143_v58, 0.0  ;;  %v468_v56 = vsel %vm218_vm10, %v453_v50, 0 }
  0xe7   :  { %v172_v19 = vpack.c.bf16 %v170_v18, %v169_v17  ;;  %1974 = vmatpush3.bf16.msra.mxu0 %v468_v56  ;;  %v552_v60 = vsel %vm535_vm6, 1, %v2241_v9  ;;  %v553_v62 = vsel %vm536_vm7, 1, %v2241_v9  ;;  %v554_v63 = vsel %vm537_vm8, 1, %v2241_v9 }
  0xe8   :  { %1963 = vmatprep.mubr.msk.bf16.mxu1 %vm211_vm13, %v171_v16  ;;  %vm539_vm4 = vcmp.lt.s32.totalorder %v2336_v10, 14  ;;  %v555_v0 = vsel %vm538_vm9, 1, %v2241_v9  ;;  %vm540_vm6 = vcmp.lt.s32.totalorder %v2346_v12, 14  ;;  %vm541_vm5 = vcmp.lt.s32.totalorder %v2329_v7, 14 }
  0xe9   :  { %v587_v1 = vsel %vm539_vm4, 1, %v2241_v9  ;;  %v588_v2 = vsel %vm540_vm6, 1, %v2241_v9  ;;  %v589_v3 = vsel %vm541_vm5, 1, %v2241_v9  ;;  %vm542_vm7 = vcmp.lt.s32.totalorder %v2341_v11, 14 }
  0xea   :  { %v590_v10 = vsel %vm542_vm7, 1, %v2241_v9  ;;  %vm547_vm14 = vcmp.lt.s32.totalorder %v2385_v30, 2  ;;  %vm582_vm1 = vcmp.lt.s32.totalorder %v2385_v30, 6  ;;  %v1876_v30 = vld [vmem:[%s2878_s5 + $0x3] ss:$0 sm:$0xff] }
  0xf0   :  { %1964 = vmatmul.mubr.msk.bf16.vlgmr.msra.gmra.mrb[0].mxu1 %vm211_vm13, %v172_v19  ;;  %v1828_v19 = vld [vmem:[%s2877_s4 + $0x10] sm:$0xf] }
  0xf1   :  { %1968 = vmatpush3.bf16.msra.mxu1 %v338_v20  ;;  %1969 = vmatprep.mubr.msk.bf16.mxu1 %vm211_vm13, %v206_v8  ;;  %v624_v20 = vsel %vm218_vm10, %v1828_v19, 0 }
  0xf2   :  { %2100 = vmatprep.subr.msk.bf16.mxu0 %vm218_vm10, %v1828_v19 }
  0xfc   :  { %1970 = vmatmul.mubr.msk.bf16.vlgmr.msra.gmra.mrb[0].mxu1 %vm211_vm13, %v207_v13 }
 0x1cf   :  { %v1971_v22 = vpop.f32.mrb[0].mxu1 }
 0x1d0   :  { %v2473_v23 = vadd.f32 %v1971_v22, %v1818_v21  ;;  %v374_v28 = vpop.f32.mrb[1].mxu1 }
 0x1d1   :  { %v399_v31 = vadd.f32 %v1818_v21, %v374_v28  ;;  %v1972_v33 = vpop.f32.mrb[2].mxu1 }
 0x1d2   :  { %v1821_v34 = vmul.f32 -1.442695, %v2473_v23  ;;  %v402_v35 = vadd.f32 %v1972_v33, %v1818_v21  ;;  %v377_v36 = vpop.f32.mrb[3].mxu1 }
 0x1d3   :  { %v1819_v37 = vmul.f32 -1.442695, %v399_v31  ;;  %v400_v39 = vadd.f32 %v1818_v21, %v377_v36  ;;  %v1827_v21 = vld [vmem:[%s2877_s4 + $0xc] sm:$0xf] }
 0x1d4   :  { %2121 = vpow2.f32 %v1821_v34  ;;  %v1822_v41 = vmul.f32 -1.442695, %v402_v35 }
 0x1d5   :  { %2123 = vpow2.f32 %v1819_v37  ;;  %v1820_v42 = vmul.f32 -1.442695, %v400_v39  ;;  %v521_v37 = vmul.f32 0.70710677, %v2399_v40 }
 0x1d6   :  { %2125 = vpow2.f32 %v1822_v41 }
 0x1d7   :  { %2127 = vpow2.f32 %v1820_v42 }
 0x1de   :  { %v2122_v44 = vpop.eup %2121 }
 0x1df   :  { %v2124_v47 = vpop.eup %2123  ;;  %v421_v51 = vadd.f32 1.0, %v2122_v44 }
 0x1e0   :  { %v419_v48 = vadd.f32 1.0, %v2124_v47  ;;  %v2126_v52 = vpop.eup %2125  ;;  %v522_v47 = vmul.f32 0.70710677, %v2405_v45 }
 0x1e1   :  { %v2128_v53 = vpop.eup %2127  ;;  %v422_v55 = vadd.f32 1.0, %v2126_v52 }
 0x1e2   :  { %2129 = vrcp.f32 %v419_v48  ;;  %v420_v54 = vadd.f32 1.0, %v2128_v53  ;;  %v520_v48 = vmul.f32 0.70710677, %v2414_v49 }
 0x1e3   :  { %2131 = vrcp.f32 %v421_v51 }
 0x1e4   :  { %2133 = vrcp.f32 %v420_v54 }
 0x1e5   :  { %2135 = vrcp.f32 %v422_v55 }
 0x1e6   :  { %2137 = vtanh.f32 %v399_v31 }
 0x1e7   :  { %2139 = vtanh.f32 %v400_v39  ;;  %v519_v39 = vmul.f32 0.70710677, %v2403_v43 }
 0x1e8   :  { %2141 = vtanh.f32 %v2473_v23 }
 0x1e9   :  { %2143 = vtanh.f32 %v402_v35  ;;  %v1823_v35 = vld [vmem:[%s2880_s7] ss:$0 sm:$0xff] }
 0x1ec   :  { %v2130_v57 = vpop.eup %2129 }
 0x1ed   :  { %435 = vrot.lane.b32.xlu0 %v2130_v57, %s2242_s29  ;;  %v2132_v58 = vpop.eup %2131 }
 0x1ee   :  { %v2134_v59 = vpop.eup %2133 }
 0x1ef   :  { %437 = vrot.lane.b32.xlu1 %v2134_v59, %s2242_s29  ;;  %v2136_v61 = vpop.eup %2135 }
 0x1f0   :  { %v2138_v7 = vpop.eup %2137 }
 0x1f1   :  { %439 = vrot.lane.b32.xlu0 %v2132_v58, %s2242_s29  ;;  %v2140_v4 = vpop.eup %2139 }
 0x1f2   :  { %v2142_v14 = vpop.eup %2141 }
 0x1f3   :  { %441 = vrot.lane.b32.xlu1 %v2136_v61, %s2242_s29  ;;  %v2144_v11 = vpop.eup %2143 }
 0x1f5   :  { %557 = vperm.xlu0 %2119, %v552_v60  }
 0x1f7   :  { %560 = vperm.xlu1 %2120, %v553_v62  }
 0x1f9   :  { %563 = vperm.xlu0 %2119, %v554_v63  }
 0x1fb   :  { %566 = vperm.xlu1 %2120, %v555_v0  }
 0x1fd   :  { %592 = vperm.xlu0 %2119, %v587_v1  }
 0x1ff   :  { %595 = vperm.xlu1 %2120, %v588_v2   ;;  %v682_v2 = vsel %vm218_vm10, %v1827_v21, 0 }
 0x201   :  { %598 = vperm.xlu0 %2119, %v589_v3  }
 0x203   :  { %601 = vperm.xlu1 %2120, %v590_v10  }
 0x25f   :  { %v436_v12 = vpop.permute.xlu0 %435 }
 0x260   :  { %v447_v6 = vmul.f32 %v2138_v7, %v436_v12 }
 0x261   :  { %v438_v5 = vpop.permute.xlu1 %437 }
 0x262   :  { %v448_v8 = vmul.f32 %v2140_v4, %v438_v5 }
 0x263   :  { %v440_v13 = vpop.permute.xlu0 %439 }
 0x264   :  { %v451_v15 = vpack.c.bf16 %v448_v8, %v447_v6  ;;  %v449_v17 = vmul.f32 %v2142_v14, %v440_v13  ;;  %v1833_v6 = vld [vmem:[%s2877_s4 + $0x14] sm:$0xf] }
 0x265   :  { %v442_v16 = vpop.permute.xlu1 %441 }
 0x266   :  { %v450_v18 = vmul.f32 %v2144_v11, %v442_v16  ;;  %1975 = vmatprep.mubr.msk.bf16.mxu0 %vm211_vm13, %v451_v15 }
 0x268   :  { %v452_v9 = vpack.c.bf16 %v450_v18, %v449_v17 }
 0x26a   :  { %1976 = vmatmul.mubr.msk.bf16.vlgmr.msra.gmra.mrb[4].mxu0 %vm211_vm13, %v452_v9 }
 0x26b   :  { %1980 = vmatpush3.bf16.msra.mxu0 %v624_v20 }
 0x26c   :  { %2101 = vmatprep.subr.msk.bf16.mxu0 %vm218_vm10, %v1827_v21 }
 0x274   :  { %v2513_v22 = vpop.permute.xlu0 %557 }
 0x275   :  { %vm568_vm4 = vcmp.eq.s32.totalorder %v2513_v22, 1 }
 0x276   :  { %v2515_v23 = vpop.permute.xlu1 %560 }
 0x277   :  { %vm569_vm5 = vcmp.eq.s32.totalorder %v2515_v23, 1 }
 0x278   :  { %v2517_v28 = vpop.permute.xlu0 %563 }
 0x279   :  { %vm570_vm8 = vcmp.eq.s32.totalorder %v2517_v28, 1 }
 0x27a   :  { %v2519_v31 = vpop.permute.xlu1 %566 }
 0x27b   :  { %vm571_vm9 = vcmp.eq.s32.totalorder %v2519_v31, 1 }
 0x27c   :  { %v2521_v33 = vpop.permute.xlu0 %592 }
 0x27d   :  { %vm2892_vm6 = vcmp.eq.s32.totalorder %v2521_v33, 1 }
 0x27e   :  { %v2523_v34 = vpop.permute.xlu1 %595 }
 0x27f   :  { %vm2893_vm7 = vcmp.eq.s32.totalorder %v2523_v34, 1 }
 0x280   :  { %v2530_v41 = vpop.permute.xlu0 %598 }
 0x281   :  { %vm605_vm2 = vcmp.eq.s32.totalorder %v2530_v41, 1 }
 0x282   :  { %v2539_v50 = vpop.permute.xlu1 %601 }
 0x283   :  { %vm606_vm3 = vcmp.eq.s32.totalorder %v2539_v50, 1 }
 0x33d   :  { %v1977_v36 = vpop.f32.mrb[4].mxu0 }
 0x33e   :  { %v2532_v42 = vadd.f32 %v1977_v36, %v1823_v35  ;;  %v504_v44 = vpop.f32.mrb[5].mxu0 }
 0x33f   :  { %v2541_v40 = vadd.f32 %v1823_v35, %v504_v44  ;;  %v1978_v43 = vpop.f32.mrb[6].mxu0 }
 0x340   :  { %v2546_v51 = vadd.f32 %v521_v37, %v2532_v42  ;;  %v2548_v45 = vadd.f32 %v1978_v43, %v1823_v35  ;;  %v507_v49 = vpop.f32.mrb[7].mxu0  ;;  %v742_v37 = vsel %vm218_vm10, %v1833_v6, 0 }
 0x341   :  { %v2553_v52 = vadd.f32 %v519_v39, %v2541_v40  ;;  %v2555_v53 = vadd.f32 %v1823_v35, %v507_v49  ;;  %v1836_v39 = vld [vmem:[%s2878_s5 + $0x1] ss:$0 sm:$0xff] }
 0x342   :  { %v2559_v54 = vadd.f32 %v522_v47, %v2548_v45  ;;  %v545_v55 = vrot.slane %v2546_v51, 6  ;;  %v580_v59 = vrot.slane %v2546_v51, 2 }
 0x343   :  { %v543_v56 = vrot.slane %v2553_v52, 6  ;;  %v578_v57 = vrot.slane %v2553_v52, 2  ;;  %v2567_v58 = vadd.f32 %v520_v48, %v2555_v53 }
 0x344   :  { %v532_v60 = vpack.c.bf16 %v2559_v54, %v2546_v51  ;;  %v546_v61 = vrot.slane %v2559_v54, 6  ;;  %v581_v62 = vrot.slane %v2559_v54, 2 }
 0x345   :  { %v544_v63 = vrot.slane %v2567_v58, 6  ;;  %v579_v0 = vrot.slane %v2567_v58, 2  ;;  %v531_v1 = vpack.c.bf16 %v2567_v58, %v2553_v52 }
 0x346   :  { %v551_v3 = vsel %vm547_vm14, %v546_v61, %v543_v56  ;;  %v548_v10 = vsel %vm547_vm14, %v545_v55, %v546_v61  ;;  %v583_v12 = vsel %vm582_vm1, %v580_v59, %v581_v62  ;;  %v586_v7 = vsel %vm582_vm1, %v581_v62, %v578_v57 }
 0x347   :  { %1981 = vmatprep.mubr.msk.bf16.mxu0 %vm211_vm13, %v531_v1  ;;  %v550_v4 = vsel %vm547_vm14, %v543_v56, %v544_v63  ;;  %v572_v5 = vsel %vm568_vm4, %v551_v3, 0.0  ;;  %v549_v8 = vsel %vm547_vm14, %v544_v63, %v545_v55  ;;  %v575_v13 = vsel %vm571_vm9, %v548_v10, 0.0 }
 0x348   :  { %1982 = vmatmul.mubr.msk.bf16.vlgmr.msra.gmra.mrb[8].mxu0 %vm211_vm13, %v532_v60  ;;  %v573_v14 = vsel %vm569_vm5, %v550_v4, 0.0  ;;  %v574_v15 = vsel %vm570_vm8, %v549_v8, 0.0  ;;  %v584_v11 = vsel %vm582_vm1, %v579_v0, %v580_v59  ;;  %v585_v16 = vsel %vm582_vm1, %v578_v57, %v579_v0 }
 0x349   :  { %1986 = vmatpush3.bf16.msra.mxu0 %v682_v2  ;;  %v576_v17 = vpack.c.bf16 %v573_v14, %v572_v5  ;;  %v577_v18 = vpack.c.bf16 %v575_v13, %v574_v15  ;;  %v607_v9 = vsel %vm2892_vm6, %v585_v16, 0.0  ;;  %v608_v19 = vsel %vm2893_vm7, %v584_v11, 0.0  ;;  %v1841_v2 = vld [vmem:[%s2879_s6 + $0x4] sm:$0xf] }
 0x34a   :  { %2102 = vmatprep.subr.msk.bf16.mxu0 %vm218_vm10, %v1833_v6  ;;  %v611_v20 = vpack.c.bf16 %v608_v19, %v607_v9  ;;  %v609_v21 = vsel %vm605_vm2, %v583_v12, 0.0  ;;  %v610_v35 = vsel %vm606_vm3, %v586_v7, 0.0  ;;  %2103 = vmatprep.subr.msk.bf16.mxu1 %vm218_vm10, %v1841_v2  ;;  %v874_v5 = vsel %vm218_vm10, %v1841_v2, 0 }
 0x34b   :  { %1987 = vmatprep.mubr.msk.bf16.mxu0 %vm211_vm13, %v576_v17  ;;  %v612_v36 = vpack.c.bf16 %v610_v35, %v609_v21  ;;  %1998 = vmatpush3.bf16.msra.mxu1 %v874_v5  ;;  %vm2894_vm6 = vcmp.eq.s32.totalorder %v2381_v27, 1  ;;  %vm2895_vm7 = vcmp.eq.s32.totalorder %v2375_v24, 1 }
 0x354   :  { %1988 = vmatmul.mubr.msk.bf16.vlgmr.msra.gmra.mrb[8].mxu0 %vm211_vm13, %v577_v18 }
 0x355   :  { %1992 = vmatpush3.bf16.msra.mxu0 %v742_v37  ;;  %1993 = vmatprep.mubr.msk.bf16.mxu0 %vm211_vm13, %v611_v20 }
 0x360   :  { %1994 = vmatmul.mubr.msk.bf16.vlgmr.msra.gmra.mrb[8].mxu0 %vm211_vm13, %v612_v36 }
 0x433   :  { %v1995_v44 = vpop.f32.mrb[8].mxu0 }
 0x434   :  { %v805_v47 = vadd.f32 %v1995_v44, %v1836_v39  ;;  %v778_v48 = vpop.f32.mrb[9].mxu0 }
 0x435   :  { %v803_v43 = vadd.f32 %v1836_v39, %v778_v48  ;;  %v1996_v49 = vpop.f32.mrb[10].mxu0 }
 0x436   :  { %v1839_v55 = vmul.f32 -1.442695, %v805_v47  ;;  %v806_v56 = vadd.f32 %v1996_v49, %v1836_v39  ;;  %v781_v57 = vpop.f32.mrb[11].mxu0  ;;  %v1843_v49 = vld [vmem:[%s2880_s7 + $0x1] ss:$0 sm:$0xff] }
 0x437   :  { %v1837_v59 = vmul.f32 -1.442695, %v803_v43  ;;  %v804_v60 = vadd.f32 %v1836_v39, %v781_v57  ;;  %v927_v57 = vmul.f32 0.70710677, %v2546_v51  ;;  %v926_v51 = vmul.f32 0.70710677, %v2567_v58 }
 0x438   :  { %2145 = vpow2.f32 %v1839_v55  ;;  %v1840_v61 = vmul.f32 -1.442695, %v806_v56 }
 0x439   :  { %2147 = vpow2.f32 %v1837_v59  ;;  %v1838_v62 = vmul.f32 -1.442695, %v804_v60 }
 0x43a   :  { %2149 = vpow2.f32 %v1840_v61  ;;  %v925_v61 = vmul.f32 0.70710677, %v2553_v52 }
 0x43b   :  { %2151 = vpow2.f32 %v1838_v62 }
 0x442   :  { %v2146_v63 = vpop.eup %2145 }
 0x443   :  { %v2148_v0 = vpop.eup %2147  ;;  %v825_v3 = vadd.f32 1.0, %v2146_v63 }
 0x444   :  { %v823_v1 = vadd.f32 1.0, %v2148_v0  ;;  %v2150_v10 = vpop.eup %2149 }
 0x445   :  { %v2152_v12 = vpop.eup %2151  ;;  %v826_v4 = vadd.f32 1.0, %v2150_v10 }
 0x446   :  { %2153 = vrcp.f32 %v823_v1  ;;  %v824_v7 = vadd.f32 1.0, %v2152_v12  ;;  %v928_v1 = vmul.f32 0.70710677, %v2559_v54 }
 0x447   :  { %2155 = vrcp.f32 %v825_v3 }
 0x448   :  { %2157 = vrcp.f32 %v824_v7 }
 0x449   :  { %2159 = vrcp.f32 %v826_v4 }
 0x44a   :  { %2161 = vtanh.f32 %v803_v43  ;;  %v1847_v43 = vld [vmem:[%s2877_s4 + $0x18] sm:$0xf] }
 0x44b   :  { %2163 = vtanh.f32 %v804_v60 }
 0x44c   :  { %2165 = vtanh.f32 %v805_v47  ;;  %v1848_v47 = vld [vmem:[%s2877_s4 + $0x1c] sm:$0xf] }
 0x44d   :  { %2167 = vtanh.f32 %v806_v56  ;;  %2104 = vmatprep.subr.msk.bf16.mxu1 %vm218_vm10, %v1848_v47  ;;  %v980_v48 = vsel %vm218_vm10, %v1848_v47, 0 }
 0x450   :  { %v2154_v6 = vpop.eup %2153 }
 0x451   :  { %839 = vrot.lane.b32.xlu0 %v2154_v6, %s2242_s29  ;;  %v2156_v8 = vpop.eup %2155 }
 0x452   :  { %v2158_v13 = vpop.eup %2157 }
 0x453   :  { %841 = vrot.lane.b32.xlu1 %v2158_v13, %s2242_s29  ;;  %v2160_v14 = vpop.eup %2159 }
 0x454   :  { %v2162_v11 = vpop.eup %2161 }
 0x455   :  { %843 = vrot.lane.b32.xlu0 %v2156_v8, %s2242_s29  ;;  %v2164_v16 = vpop.eup %2163 }
 0x456   :  { %v2166_v20 = vpop.eup %2165 }
 0x457   :  { %845 = vrot.lane.b32.xlu1 %v2160_v14, %s2242_s29  ;;  %v2168_v35 = vpop.eup %2167 }
 0x4c3   :  { %v840_v15 = vpop.permute.xlu0 %839 }
 0x4c4   :  { %v851_v18 = vmul.f32 %v2162_v11, %v840_v15  ;;  %v1038_v11 = vsel %vm218_vm10, %v1847_v43, 0 }
 0x4c5   :  { %v842_v17 = vpop.permute.xlu1 %841 }
 0x4c6   :  { %v852_v9 = vmul.f32 %v2164_v16, %v842_v17 }
 0x4c7   :  { %v844_v19 = vpop.permute.xlu0 %843 }
 0x4c8   :  { %v855_v21 = vpack.c.bf16 %v852_v9, %v851_v18  ;;  %v853_v37 = vmul.f32 %v2166_v20, %v844_v19 }
 0x4c9   :  { %v846_v36 = vpop.permute.xlu1 %845 }
 0x4ca   :  { %v854_v39 = vmul.f32 %v2168_v35, %v846_v36  ;;  %1999 = vmatprep.mubr.msk.bf16.mxu1 %vm211_vm13, %v855_v21  ;;  %v1853_v21 = vld [vmem:[%s2877_s4 + $0x20] sm:$0xf] }
 0x4cc   :  { %v856_v44 = vpack.c.bf16 %v854_v39, %v853_v37 }
 0x4ce   :  { %2000 = vmatmul.mubr.msk.bf16.vlgmr.msra.gmra.mrb[4].mxu1 %vm211_vm13, %v856_v44 }
 0x4cf   :  { %2004 = vmatpush3.bf16.msra.mxu1 %v980_v48 }
 0x4d0   :  { %2105 = vmatprep.subr.msk.bf16.mxu1 %vm218_vm10, %v1847_v43 }
 0x5a1   :  { %v2001_v55 = vpop.f32.mrb[4].mxu1 }
 0x5a2   :  { %v2648_v56 = vadd.f32 %v2001_v55, %v1843_v49  ;;  %v910_v59 = vpop.f32.mrb[5].mxu1 }
 0x5a3   :  { %v2651_v60 = vadd.f32 %v1843_v49, %v910_v59  ;;  %v2002_v62 = vpop.f32.mrb[6].mxu1 }
 0x5a4   :  { %v2655_v63 = vadd.f32 %v927_v57, %v2648_v56  ;;  %v2657_v0 = vadd.f32 %v2002_v62, %v1843_v49  ;;  %v913_v2 = vpop.f32.mrb[7].mxu1  ;;  %v1098_v57 = vsel %vm218_vm10, %v1853_v21, 0 }
 0x5a5   :  { %v2661_v3 = vadd.f32 %v925_v61, %v2651_v60  ;;  %v2663_v10 = vadd.f32 %v1843_v49, %v913_v2 }
 0x5a6   :  { %v2667_v12 = vadd.f32 %v928_v1, %v2657_v0  ;;  %v943_v52 = vrot.slane %v2655_v63, 7  ;;  %v957_v54 = vrot.slane %v2655_v63, 1 }
 0x5a7   :  { %v941_v7 = vrot.slane %v2661_v3, 7  ;;  %v955_v4 = vrot.slane %v2661_v3, 1  ;;  %v2673_v5 = vadd.f32 %v926_v51, %v2663_v10 }
 0x5a8   :  { %v938_v6 = vpack.c.bf16 %v2667_v12, %v2655_v63  ;;  %v944_v8 = vrot.slane %v2667_v12, 7  ;;  %v958_v58 = vrot.slane %v2667_v12, 1 }
 0x5a9   :  { %v942_v13 = vrot.slane %v2673_v5, 7  ;;  %v956_v14 = vrot.slane %v2673_v5, 1  ;;  %v937_v15 = vpack.c.bf16 %v2673_v5, %v2661_v3 }
 0x5aa   :  { %v948_v16 = vsel %vm142_vm11, %v944_v8, %v941_v7  ;;  %v945_v17 = vsel %vm142_vm11, %v943_v52, %v944_v8  ;;  %v959_v18 = vsel %vm177_vm12, %v957_v54, %v958_v58  ;;  %v962_v9 = vsel %vm177_vm12, %v958_v58, %v955_v4  ;;  %v1861_v58 = vld [vmem:[%s2879_s6 + $0x8] sm:$0xf] }
 0x5ab   :  { %2005 = vmatprep.mubr.msk.bf16.mxu1 %vm211_vm13, %v937_v15  ;;  %v947_v19 = vsel %vm142_vm11, %v941_v7, %v942_v13  ;;  %v949_v20 = vsel %vm163_vm15, %v948_v16, 0.0  ;;  %v946_v35 = vsel %vm142_vm11, %v942_v13, %v943_v52  ;;  %v952_v36 = vsel %vm166_vm0, %v945_v17, 0.0  ;;  %2107 = vmatprep.subr.msk.bf16.mxu0 %vm218_vm10, %v1861_v58 }
 0x5ac   :  { %2006 = vmatmul.mubr.msk.bf16.vlgmr.msra.gmra.mrb[8].mxu1 %vm211_vm13, %v938_v6  ;;  %v950_v37 = vsel %vm2894_vm6, %v947_v19, 0.0  ;;  %v951_v39 = vsel %vm2895_vm7, %v946_v35, 0.0  ;;  %v960_v25 = vsel %vm177_vm12, %v956_v14, %v957_v54  ;;  %v961_v44 = vsel %vm177_vm12, %v955_v4, %v956_v14 }
 0x5ad   :  { %2010 = vmatpush3.bf16.msra.mxu1 %v1038_v11  ;;  %v953_v47 = vpack.c.bf16 %v950_v37, %v949_v20  ;;  %v954_v48 = vpack.c.bf16 %v952_v36, %v951_v39  ;;  %vm2896_vm11 = vcmp.eq.s32.totalorder %v2390_v32, 1  ;;  %vm2897_vm15 = vcmp.eq.s32.totalorder %v2383_v29, 1  ;;  %v1856_v29 = vld [vmem:[%s2878_s5 + $0x2] ss:$0 sm:$0xff] }
 0x5ae   :  { %v963_v26 = vsel %vm2896_vm11, %v961_v44, 0.0  ;;  %v964_v43 = vsel %vm2897_vm15, %v960_v25, 0.0  ;;  %2106 = vmatprep.subr.msk.bf16.mxu1 %vm218_vm10, %v1853_v21  ;;  %vm2898_vm0 = vcmp.eq.s32.totalorder %v2410_v46, 1  ;;  %vm2899_vm6 = vcmp.eq.s32.totalorder %v2394_v38, 1 }
 0x5af   :  { %v967_v27 = vpack.c.bf16 %v964_v43, %v963_v26  ;;  %v965_v24 = vsel %vm2898_vm0, %v959_v18, 0.0  ;;  %v966_v49 = vsel %vm2899_vm6, %v962_v9, 0.0  ;;  %2011 = vmatprep.mubr.msk.bf16.mxu1 %vm211_vm13, %v953_v47  ;;  %v1230_v17 = vsel %vm218_vm10, %v1861_v58, 0 }
 0x5b0   :  { %v968_v55 = vpack.c.bf16 %v966_v49, %v965_v24  ;;  %2022 = vmatpush3.bf16.msra.mxu0 %v1230_v17  ;;  %vm2900_vm12 = vcmp.eq.s32.totalorder %v2523_v34, 1 }
 0x5b8   :  { %2012 = vmatmul.mubr.msk.bf16.vlgmr.msra.gmra.mrb[8].mxu1 %vm211_vm13, %v954_v48 }
 0x5b9   :  { %2016 = vmatpush3.bf16.msra.mxu1 %v1098_v57  ;;  %2017 = vmatprep.mubr.msk.bf16.mxu1 %vm211_vm13, %v967_v27 }
 0x5c4   :  { %2018 = vmatmul.mubr.msk.bf16.vlgmr.msra.gmra.mrb[8].mxu1 %vm211_vm13, %v968_v55  ;;  %v1868_v55 = vld [vmem:[%s2877_s4 + $0x28] sm:$0xf] }
 0x5c5   :  { %2108 = vmatprep.subr.msk.bf16.mxu0 %vm218_vm10, %v1868_v55  ;;  %v1336_v57 = vsel %vm218_vm10, %v1868_v55, 0 }
 0x697   :  { %v2019_v32 = vpop.f32.mrb[8].mxu1 }
 0x698   :  { %v1161_v46 = vadd.f32 %v2019_v32, %v1856_v29  ;;  %v1134_v38 = vpop.f32.mrb[9].mxu1  ;;  %v1863_v32 = vld [vmem:[%s2880_s7 + $0x2] ss:$0 sm:$0xff] }
 0x699   :  { %v1159_v59 = vadd.f32 %v1856_v29, %v1134_v38  ;;  %v2020_v61 = vpop.f32.mrb[10].mxu1  ;;  %v935_v38 = vadd.f32 %v2648_v56, %v2532_v42 }
 0x69a   :  { %v1859_v62 = vmul.f32 -1.442695, %v1161_v46  ;;  %v1162_v1 = vadd.f32 %v2020_v61, %v1856_v29  ;;  %v1137_v2 = vpop.f32.mrb[11].mxu1 }
 0x69b   :  { %v1857_v51 = vmul.f32 -1.442695, %v1159_v59  ;;  %v1160_v52 = vadd.f32 %v1856_v29, %v1137_v2  ;;  %v1867_v29 = vld [vmem:[%s2877_s4 + $0x24] sm:$0xf]  ;;  %v936_v2 = vadd.f32 %v2657_v0, %v2548_v45  ;;  %v1282_v45 = vmul.f32 0.70710677, %v2673_v5 }
 0x69c   :  { %2169 = vpow2.f32 %v1859_v62  ;;  %v1860_v7 = vmul.f32 -1.442695, %v1162_v1  ;;  %v1283_v62 = vmul.f32 0.70710677, %v2655_v63 }
 0x69d   :  { %2171 = vpow2.f32 %v1857_v51  ;;  %v1858_v4 = vmul.f32 -1.442695, %v1160_v52  ;;  %v934_v51 = vadd.f32 %v2663_v10, %v2555_v53 }
 0x69e   :  { %2173 = vpow2.f32 %v1860_v7  ;;  %v1281_v7 = vmul.f32 0.70710677, %v2661_v3 }
 0x69f   :  { %2175 = vpow2.f32 %v1858_v4 }
 0x6a6   :  { %v2170_v54 = vpop.eup %2169 }
 0x6a7   :  { %v2172_v6 = vpop.eup %2171  ;;  %v1181_v13 = vadd.f32 1.0, %v2170_v54 }
 0x6a8   :  { %v1179_v8 = vadd.f32 1.0, %v2172_v6  ;;  %v2174_v14 = vpop.eup %2173 }
 0x6a9   :  { %v2176_v15 = vpop.eup %2175  ;;  %v1182_v16 = vadd.f32 1.0, %v2174_v14 }
 0x6aa   :  { %2177 = vrcp.f32 %v1179_v8  ;;  %v1180_v11 = vadd.f32 1.0, %v2176_v15 }
 0x6ab   :  { %2179 = vrcp.f32 %v1181_v13 }
 0x6ac   :  { %2181 = vrcp.f32 %v1180_v11 }
 0x6ad   :  { %2183 = vrcp.f32 %v1182_v16 }
 0x6ae   :  { %2185 = vtanh.f32 %v1159_v59  ;;  %v933_v59 = vadd.f32 %v2651_v60, %v2541_v40  ;;  %v1284_v40 = vmul.f32 0.70710677, %v2667_v12 }
 0x6af   :  { %2187 = vtanh.f32 %v1160_v52 }
 0x6b0   :  { %2189 = vtanh.f32 %v1161_v46 }
 0x6b1   :  { %2191 = vtanh.f32 %v1162_v1 }
 0x6b4   :  { %v2178_v18 = vpop.eup %2177 }
 0x6b5   :  { %1195 = vrot.lane.b32.xlu0 %v2178_v18, %s2242_s29  ;;  %v2180_v9 = vpop.eup %2179 }
 0x6b6   :  { %v2182_v19 = vpop.eup %2181 }
 0x6b7   :  { %1197 = vrot.lane.b32.xlu1 %v2182_v19, %s2242_s29  ;;  %v2184_v20 = vpop.eup %2183  ;;  %v1394_v19 = vsel %vm218_vm10, %v1867_v29, 0 }
 0x6b8   :  { %v2186_v35 = vpop.eup %2185 }
 0x6b9   :  { %1199 = vrot.lane.b32.xlu0 %v2180_v9, %s2242_s29  ;;  %v2188_v36 = vpop.eup %2187 }
 0x6ba   :  { %v2190_v47 = vpop.eup %2189 }
 0x6bb   :  { %1201 = vrot.lane.b32.xlu1 %v2184_v20, %s2242_s29  ;;  %v2192_v26 = vpop.eup %2191 }
 0x727   :  { %v1196_v21 = vpop.permute.xlu0 %1195 }
 0x728   :  { %v1207_v39 = vmul.f32 %v2186_v35, %v1196_v21 }
 0x729   :  { %v1198_v37 = vpop.permute.xlu1 %1197 }
 0x72a   :  { %v1208_v25 = vmul.f32 %v2188_v36, %v1198_v37 }
 0x72b   :  { %v1200_v44 = vpop.permute.xlu0 %1199 }
 0x72c   :  { %v1211_v48 = vpack.c.bf16 %v1208_v25, %v1207_v39  ;;  %v1209_v27 = vmul.f32 %v2190_v47, %v1200_v44  ;;  %v1873_v44 = vld [vmem:[%s2877_s4 + $0x2c] sm:$0xf] }
 0x72d   :  { %v1202_v43 = vpop.permute.xlu1 %1201  ;;  %v1454_v23 = vsel %vm218_vm10, %v1873_v44, 0 }
 0x72e   :  { %v1210_v24 = vmul.f32 %v2192_v26, %v1202_v43  ;;  %2023 = vmatprep.mubr.msk.bf16.mxu0 %vm211_vm13, %v1211_v48 }
 0x730   :  { %v1212_v49 = vpack.c.bf16 %v1210_v24, %v1209_v27 }
 0x732   :  { %2024 = vmatmul.mubr.msk.bf16.vlgmr.msra.gmra.mrb[12].mxu0 %vm211_vm13, %v1212_v49 }
 0x733   :  { %2028 = vmatpush3.bf16.msra.mxu0 %v1336_v57 }
 0x734   :  { %2109 = vmatprep.subr.msk.bf16.mxu0 %vm218_vm10, %v1867_v29 }
 0x805   :  { %v2025_v46 = vpop.f32.mrb[12].mxu0 }
 0x806   :  { %v1275_v61 = vadd.f32 %v2025_v46, %v1863_v32  ;;  %v1266_v1 = vpop.f32.mrb[13].mxu0 }
 0x807   :  { %v1267_v52 = vadd.f32 %v1863_v32, %v1266_v1  ;;  %v2026_v4 = vpop.f32.mrb[14].mxu0 }
 0x808   :  { %v1287_v54 = vadd.f32 %v1283_v62, %v1275_v61  ;;  %v2764_v6 = vadd.f32 %v1275_v61, %v935_v38  ;;  %v1278_v42 = vadd.f32 %v2026_v4, %v1863_v32  ;;  %v1269_v56 = vpop.f32.mrb[15].mxu0 }
 0x809   :  { %v1285_v60 = vadd.f32 %v1281_v7, %v1267_v52  ;;  %v2767_v63 = vadd.f32 %v1267_v52, %v933_v59  ;;  %v1270_v8 = vadd.f32 %v1863_v32, %v1269_v56  ;;  %v1881_v7 = vld [vmem:[%s2879_s6 + $0xc] sm:$0xf] }
 0x80a   :  { %v1299_v0 = vrot.slane %v1287_v54, 6  ;;  %v1288_v58 = vadd.f32 %v1284_v40, %v1278_v42  ;;  %v2770_v53 = vadd.f32 %v1278_v42, %v936_v2  ;;  %v1313_v15 = vrot.slane %v1287_v54, 2  ;;  %2111 = vmatprep.subr.msk.bf16.mxu1 %vm218_vm10, %v1881_v7 }
 0x80b   :  { %v1297_v10 = vrot.slane %v1285_v60, 6  ;;  %v1311_v3 = vrot.slane %v1285_v60, 2  ;;  %v1286_v13 = vadd.f32 %v1282_v45, %v1270_v8  ;;  %v2772_v14 = vadd.f32 %v1270_v8, %v934_v51 }
 0x80c   :  { %v1294_v11 = vpack.c.bf16 %v1288_v58, %v1287_v54  ;;  %v1300_v16 = vrot.slane %v1288_v58, 6  ;;  %v1314_v12 = vrot.slane %v1288_v58, 2 }
 0x80d   :  { %v1293_v17 = vpack.c.bf16 %v1286_v13, %v1285_v60  ;;  %v1298_v18 = vrot.slane %v1286_v13, 6  ;;  %v1312_v9 = vrot.slane %v1286_v13, 2  ;;  %v1586_v60 = vsel %vm218_vm10, %v1881_v7, 0 }
 0x80e   :  { %v1301_v5 = vsel %vm547_vm14, %v1299_v0, %v1300_v16  ;;  %v1315_v20 = vsel %vm582_vm1, %v1313_v15, %v1314_v12  ;;  %v1318_v21 = vsel %vm582_vm1, %v1314_v12, %v1311_v3  ;;  %v1304_v35 = vsel %vm547_vm14, %v1300_v16, %v1297_v10  ;;  %2046 = vmatpush3.bf16.msra.mxu1 %v1586_v60 }
 0x80f   :  { %v1308_v36 = vsel %vm571_vm9, %v1301_v5, 0.0  ;;  %v1321_v37 = vsel %vm605_vm2, %v1315_v20, 0.0  ;;  %v1322_v39 = vsel %vm606_vm3, %v1318_v21, 0.0  ;;  %v1302_v25 = vsel %vm547_vm14, %v1298_v18, %v1299_v0  ;;  %2029 = vmatprep.mubr.msk.bf16.mxu0 %vm211_vm13, %v1293_v17 }
 0x810   :  { %v1307_v47 = vsel %vm570_vm8, %v1302_v25, 0.0  ;;  %2030 = vmatmul.mubr.msk.bf16.vlgmr.msra.gmra.mrb[16].mxu0 %vm211_vm13, %v1294_v11  ;;  %v1303_v31 = vsel %vm547_vm14, %v1297_v10, %v1298_v18  ;;  %v1305_v41 = vsel %vm568_vm4, %v1304_v35, 0.0  ;;  %v1316_v50 = vsel %vm582_vm1, %v1312_v9, %v1313_v15  ;;  %v1643_v35 = vld [vmem:[%s2881_s8] sm:$0xf] }
 0x811   :  { %2034 = vmatpush3.bf16.msra.mxu0 %v1394_v19  ;;  %v1306_v48 = vsel %vm569_vm5, %v1303_v31, 0.0  ;;  %v1310_v26 = vpack.c.bf16 %v1308_v36, %v1307_v47  ;;  %v1317_v28 = vsel %vm582_vm1, %v1311_v3, %v1312_v9  ;;  %v1320_v43 = vsel %vm2900_vm12, %v1316_v50, 0.0  ;;  %2112 = vmatprep.subr.msk.bf16.mxu1 %vm218_vm10, %v1643_v35 }
 0x812   :  { %v1309_v27 = vpack.c.bf16 %v1306_v48, %v1305_v41  ;;  %2110 = vmatprep.subr.msk.bf16.mxu0 %vm218_vm10, %v1873_v44  ;;  %vm2901_vm14 = vcmp.eq.s32.totalorder %v2521_v33, 1  ;;  %v1324_v24 = vpack.c.bf16 %v1322_v39, %v1321_v37  ;;  %v1664_v36 = vsel %vm218_vm10, %v1643_v35, 0  ;;  %v1883_v37 = vld [vmem:[%s2880_s7 + $0x3] ss:$0 sm:$0xff] }
 0x813   :  { %v1319_v22 = vsel %vm2901_vm14, %v1317_v28, 0.0 }
 0x814   :  { %v1323_v49 = vpack.c.bf16 %v1320_v43, %v1319_v22  ;;  %2035 = vmatprep.mubr.msk.bf16.mxu0 %vm211_vm13, %v1309_v27 }
 0x81c   :  { %2036 = vmatmul.mubr.msk.bf16.vlgmr.msra.gmra.mrb[16].mxu0 %vm211_vm13, %v1310_v26 }
 0x81d   :  { %2040 = vmatpush3.bf16.msra.mxu0 %v1454_v23  ;;  %2041 = vmatprep.mubr.msk.bf16.mxu0 %vm211_vm13, %v1323_v49 }
 0x828   :  { %2042 = vmatmul.mubr.msk.bf16.vlgmr.msra.gmra.mrb[16].mxu0 %vm211_vm13, %v1324_v24 }
 0x8fb   :  { %v2043_v34 = vpop.f32.mrb[16].mxu0 }
 0x8fc   :  { %v1517_v33 = vadd.f32 %v2043_v34, %v1876_v30  ;;  %v1490_v55 = vpop.f32.mrb[17].mxu0 }
 0x8fd   :  { %v1515_v57 = vadd.f32 %v1876_v30, %v1490_v55  ;;  %v2044_v29 = vpop.f32.mrb[18].mxu0 }
 0x8fe   :  { %v1879_v32 = vmul.f32 -1.442695, %v1517_v33  ;;  %v1518_v46 = vadd.f32 %v2044_v29, %v1876_v30  ;;  %v1493_v38 = vpop.f32.mrb[19].mxu0 }
 0x8ff   :  { %v1877_v59 = vmul.f32 -1.442695, %v1515_v57  ;;  %v1516_v61 = vadd.f32 %v1876_v30, %v1493_v38 }
 0x900   :  { %2193 = vpow2.f32 %v1879_v32  ;;  %v1880_v62 = vmul.f32 -1.442695, %v1518_v46 }
 0x901   :  { %2195 = vpow2.f32 %v1877_v59  ;;  %v1878_v1 = vmul.f32 -1.442695, %v1516_v61 }
 0x902   :  { %2197 = vpow2.f32 %v1880_v62 }
 0x903   :  { %2199 = vpow2.f32 %v1878_v1 }
 0x90a   :  { %v2194_v2 = vpop.eup %2193 }
 0x90b   :  { %v2196_v51 = vpop.eup %2195  ;;  %v1537_v4 = vadd.f32 1.0, %v2194_v2  ;;  %v1889_v2 = vld [vmem:[%s2884_s11] ss:$0 sm:$0xff] }
 0x90c   :  { %v1535_v52 = vadd.f32 1.0, %v2196_v51  ;;  %v2198_v54 = vpop.eup %2197 }
 0x90d   :  { %v2200_v42 = vpop.eup %2199  ;;  %v1538_v56 = vadd.f32 1.0, %v2198_v54 }
 0x90e   :  { %2201 = vrcp.f32 %v1535_v52  ;;  %v1536_v40 = vadd.f32 1.0, %v2200_v42 }
 0x90f   :  { %2203 = vrcp.f32 %v1537_v4 }
 0x910   :  { %2205 = vrcp.f32 %v1536_v40 }
 0x911   :  { %2207 = vrcp.f32 %v1538_v56 }
 0x912   :  { %2209 = vtanh.f32 %v1515_v57 }
 0x913   :  { %2211 = vtanh.f32 %v1516_v61 }
 0x914   :  { %2213 = vtanh.f32 %v1517_v33 }
 0x915   :  { %2215 = vtanh.f32 %v1518_v46 }
 0x918   :  { %v2202_v8 = vpop.eup %2201 }
 0x919   :  { %1551 = vrot.lane.b32.xlu0 %v2202_v8, %s2242_s29  ;;  %v2204_v45 = vpop.eup %2203 }
 0x91a   :  { %v2206_v0 = vpop.eup %2205 }
 0x91b   :  { %1553 = vrot.lane.b32.xlu1 %v2206_v0, %s2242_s29  ;;  %v2208_v58 = vpop.eup %2207 }
 0x91c   :  { %v2210_v3 = vpop.eup %2209 }
 0x91d   :  { %1555 = vrot.lane.b32.xlu0 %v2204_v45, %s2242_s29  ;;  %v2212_v13 = vpop.eup %2211 }
 0x91e   :  { %v2214_v17 = vpop.eup %2213 }
 0x91f   :  { %1557 = vrot.lane.b32.xlu1 %v2208_v58, %s2242_s29  ;;  %v2216_v9 = vpop.eup %2215 }
 0x98b   :  { %v1552_v10 = vpop.permute.xlu0 %1551 }
 0x98c   :  { %v1563_v11 = vmul.f32 %v2210_v3, %v1552_v10 }
 0x98d   :  { %v1554_v15 = vpop.permute.xlu1 %1553 }
 0x98e   :  { %v1564_v16 = vmul.f32 %v2212_v13, %v1554_v15 }
 0x98f   :  { %v1556_v12 = vpop.permute.xlu0 %1555 }
 0x990   :  { %v1567_v18 = vpack.c.bf16 %v1564_v16, %v1563_v11  ;;  %v1565_v5 = vmul.f32 %v2214_v17, %v1556_v12 }
 0x991   :  { %v1558_v19 = vpop.permute.xlu1 %1557 }
 0x992   :  { %v1566_v20 = vmul.f32 %v2216_v9, %v1558_v19  ;;  %2047 = vmatprep.mubr.msk.bf16.mxu1 %vm211_vm13, %v1567_v18 }
 0x994   :  { %v1568_v21 = vpack.c.bf16 %v1566_v20, %v1565_v5 }
 0x996   :  { %2048 = vmatmul.mubr.msk.bf16.vlgmr.msra.gmra.mrb[12].mxu1 %vm211_vm13, %v1568_v21 }
 0x997   :  { %2052 = vmatpush3.bf16.msra.mxu1 %v1664_v36 }
 0xa69   :  { %v2049_v39 = vpop.f32.mrb[12].mxu1 }
 0xa6a   :  { %v1631_v25 = vadd.f32 %v2049_v39, %v1883_v37  ;;  %v1622_v44 = vpop.f32.mrb[13].mxu1 }
 0xa6b   :  { %v1623_v47 = vadd.f32 %v1883_v37, %v1622_v44  ;;  %v2050_v31 = vpop.f32.mrb[14].mxu1 }
 0xa6c   :  { %v1639_v41 = vadd.f32 %v1631_v25, %v2764_v6  ;;  %v1634_v50 = vadd.f32 %v2050_v31, %v1883_v37  ;;  %v1625_v48 = vpop.f32.mrb[15].mxu1  ;;  %v1721_v6 = vld [vmem:[%s2883_s10] sm:$0xf] }
 0xa6d   :  { %v1637_v26 = vadd.f32 %v1623_v47, %v2767_v63  ;;  %v1626_v28 = vadd.f32 %v1883_v37, %v1625_v48  ;;  %2113 = vmatprep.subr.msk.bf16.mxu0 %vm218_vm10, %v1721_v6  ;;  %v1736_v63 = vsel %vm218_vm10, %v1721_v6, 0 }
 0xa6e   :  { %v1640_v43 = vadd.f32 %v1634_v50, %v2770_v53  ;;  %2058 = vmatpush3.bf16.msra.mxu0 %v1736_v63  ;;  %v1886_v53 = vld [vmem:[%s2882_s9] ss:$0 sm:$0xff] }
 0xa6f   :  { %v1638_v27 = vadd.f32 %v1626_v28, %v2772_v14 }
 0xa70   :  { %v1642_v22 = vpack.c.bf16 %v1640_v43, %v1639_v41 }
 0xa71   :  { %v1641_v24 = vpack.c.bf16 %v1638_v27, %v1637_v26 }
 0xa72   :  { %1655 = vrot.lane.b32.xlu1 %v1642_v22, %s2242_s29 }
 0xa73   :  { %1653 = vrot.lane.b32.xlu0 %v1641_v24, %s2242_s29  ;;  %s2243_s29 = smov [#allocation2]  }
 0xa74   :  { %s1796_s26 = sshll.u32 %s2243_s29, 4  ;;  %s1797_s26 = int_to_ptr.vmem [resolvable:$true] %s1796_s26 }
 0xa75   :  { %s2217_s27 = scalar_lea.vmem %s1797_s26, 512  ;;  %p2222_p1 = scmp.lt.s32.totalorder %s1797_s26, %s1797_s26 }
 0xa76   :  { %p2218_p0 = scmp.ne.s32.totalorder %s1797_s26, %s2217_s27  ;;  %p2223_p2 = scmp.lt.s32.totalorder %s2217_s27, %s2217_s27 }
 0xa78   :  { %p2224_p3 = por %p2223_p2, %p2222_p1 }
 0xa7a   :  { %p2225_p4 = pnand %p2224_p3, %p2218_p0 }
 0xae4   :  { %v1656_v23 = vpop.permute.xlu1 %1655 }
 0xae5   :  { %v1654_v49 = vpop.permute.xlu0 %1653 }
 0xae6   :  { %2053 = vmatprep.mubr.msk.bf16.mxu1 %vm211_vm13, %v1654_v49 }
 0xae7   :  { %2054 = vmatmul.mubr.msk.bf16.vlgmr.msra.gmra.mrb[16].mxu1 %vm211_vm13, %v1656_v23 }
 0xbba   :  { %v2055_v14 = vpop.f32.mrb[16].mxu1 }
 0xbbb   :  { %v1709_v30 = vadd.f32 %v2055_v14, %v1886_v53  ;;  %v1700_v34 = vpop.f32.mrb[17].mxu1 }
 0xbbc   :  { %v1701_v33 = vadd.f32 %v1886_v53, %v1700_v34  ;;  %v2056_v55 = vpop.f32.mrb[18].mxu1 }
 0xbbd   :  { %v1712_v57 = vadd.f32 %v2056_v55, %v1886_v53  ;;  %v1703_v29 = vpop.f32.mrb[19].mxu1  ;;  %v1717_v46 = vmax.f32 %v1709_v30, 0.0 }
 0xbbe   :  { %v1704_v32 = vadd.f32 %v1886_v53, %v1703_v29  ;;  %v1715_v59 = vmax.f32 %v1701_v33, 0.0 }
 0xbbf   :  { %v1718_v38 = vmax.f32 %v1712_v57, 0.0 }
 0xbc0   :  { %v1716_v61 = vmax.f32 %v1704_v32, 0.0 }
 0xbc1   :  { %v1720_v62 = vpack.c.bf16 %v1718_v38, %v1717_v46 }
 0xbc2   :  { %v1719_v1 = vpack.c.bf16 %v1716_v61, %v1715_v59 }
 0xbc4   :  { %2059 = vmatprep.mubr.msk.bf16.mxu0 %vm211_vm13, %v1719_v1 }
 0xbc5   :  { %2060 = vmatmul.mubr.msk.bf16.vlgmr.msra.gmra.mrb[20].mxu0 %vm211_vm13, %v1720_v62 }
 0xc98   :  { %v2061_v51 = vpop.f32.mrb[20].mxu0 }
 0xc99   :  { %v1781_v52 = vadd.f32 %v2061_v51, %v1889_v2  ;;  %v1772_v7 = vpop.f32.mrb[21].mxu0 }
 0xc9a   :  { %v1773_v4 = vadd.f32 %v1889_v2, %v1772_v7  ;;  %v2062_v54 = vpop.f32.mrb[22].mxu0 }
 0xc9b   :  { %1789 = vst [vmem:[#allocation2 + $0x10] sm:$0xff] %v1781_v52  ;;  %v1784_v42 = vadd.f32 %v2062_v54, %v1889_v2  ;;  %v1775_v40 = vpop.f32.mrb[23].mxu0 }
 0xc9c   :  { %1787 = vst [vmem:[#allocation2] sm:$0xff] %v1773_v4  ;;  %v1776_v56 = vadd.f32 %v1889_v2, %v1775_v40 }
 0xc9d   :  { %1790 = vst [vmem:[#allocation2 + $0x18] sm:$0xff] %v1784_v42 }
 0xc9e   :  { %1788 = vst [vmem:[#allocation2 + $0x8] sm:$0xff] %v1776_v56 }
 0xc9f   :  { %2228 = shalt.err (!%p2225_p4)
}
 0xca0   :  { %s2229_s30 = scalar_lea.hbm %s2885_s12, 512 }
 0xca1   :  { %p2230_p5 = scmp.ne.s32.totalorder %s2885_s12, %s2229_s30  ;;  %p2233_p6 = scmp.lt.u32.totalorder %s2229_s30, %s2885_s12 }
 0xca3   :  { %p2235_p7 = pnand %p2233_p6, %p2230_p5 }
 0xca5   :  { %2238 = shalt.err (!%p2235_p7)
}
 0xca6   :  { %s2244_s16 = smov 128   ;;  %s2245_s17 = smov 8  }
 0xca7   :  { %1802 = dma.vmem_to_hbm [thread:$0]  %s1797_s26, 512, %s2885_s12, [#allocation3], %s2244_s16, %s2244_s16, %s2245_s17  }
 0xca8   :  { %2239 = dma.done.wait [#allocation3], 512  }
 0xca9   :  { %2240 = vsyncadd [#allocation3], 4294966784 }
 0xcaa   :  { %1806 = vsyncpa [#allocation3], 1 }

</bundles_post_ra>
